<compile_context>
chip_gen: v6e
topology: v6e:2x2x1
jax: 0.10.0
libtpu: 0.0.40
codegen_flags: <defaults>
</compile_context>

<pallas_src>
import functools

import jax
import jax.numpy as jnp
from jax import lax
from jax.experimental import pallas as pl
from jax.experimental.pallas import tpu as pltpu

# ---- small synthetic config (ViT-L/14 text tower analogue, shrunk) ----------
B = 2          # batch
L = 8          # context length (max_length analogue)
D = 32         # transformer width
H = 2          # attention heads
HD = D // H    # head dim
LAYERS = 2     # transformer layers
VOCAB = 64     # vocab size (highest id acts as EOT)
EMBED = 32     # text_projection output dim
EPS = 1e-5     # LayerNorm eps (PyTorch default)
NEG = -1e30    # finite "minus infinity" for the mask

VEC_ROWS = 8   # packed per-layer vector slab rows
VEC_W = 128    # packed slab lane width (>= 4*D)
# slab row layout: 0 ln1_g | 1 ln1_b | 2 ln2_g | 3 ln2_b | 4 bo | 5 bpr
#                  6 bqkv (3*D lanes) | 7 bfc (4*D lanes)


def _layernorm(x, g, b):
    mu = jnp.mean(x, axis=-1, keepdims=True)
    var = jnp.mean((x - mu) ** 2, axis=-1, keepdims=True)
    return (x - mu) * lax.rsqrt(var + EPS) * g + b


def _bf16(x):
    return x.astype(jnp.bfloat16)


# ---------------------------- fused Pallas kernel -----------------------------
def clip_tower_kernel(x0_ref, sel_ref, mask_ref,
                      wqkv_ref, wo_ref, wfc_ref, wpr_ref,
                      vecs_ref, lnf_ref, wproj_ref,
                      out_ref, *, heads, d):
    """Whole CLIP text transformer in one invocation (no grid)."""
    hd = d // heads
    layers = wqkv_ref.shape[0]

    x = x0_ref[...]                                   # (B*L, D) f32
    mask = mask_ref[...]                              # (B*L, B*L) block-diag causal

    # Static layer loop over VMEM-resident stacked weights (LAYERS is tiny).
    # TODO(synk): at real depth/width, stream weights with a grid=(LAYERS,)
    # "arbitrary" axis instead of keeping all layers resident.
    for li in range(layers):
        vec = vecs_ref[li]                            # (8, 128) f32 slab
        ln1_g, ln1_b = vec[0:1, :d], vec[1:2, :d]
        ln2_g, ln2_b = vec[2:3, :d], vec[3:4, :d]
        bo, bpr = vec[4:5, :d], vec[5:6, :d]
        bqkv = vec[6:7, :3 * d]
        bfc = vec[7:8, :4 * d]

        # ---- pre-LN causal multi-head self-attention (fused QKV, 2-D matmuls)
        h = _layernorm(x, ln1_g, ln1_b)               # (B*L, D)
        qkv = jnp.dot(_bf16(h), wqkv_ref[li],         # (B*L, 3D), scale pre-folded
                      preferred_element_type=jnp.float32) + bqkv
        head_outs = []
        for i in range(heads):                        # static unroll (H small)
            q = qkv[:, i * hd:(i + 1) * hd]
            k = qkv[:, d + i * hd:d + (i + 1) * hd]
            v = qkv[:, 2 * d + i * hd:2 * d + (i + 1) * hd]
            s = lax.dot_general(_bf16(q), _bf16(k), (((1,), (1,)), ((), ())),
                                preferred_element_type=jnp.float32) + mask
            s = s - jnp.max(s, axis=-1, keepdims=True)
            p = jnp.exp(s)
            p = p * pl.reciprocal(jnp.sum(p, axis=-1, keepdims=True), approx=True)
            head_outs.append(jnp.dot(_bf16(p), _bf16(v),
                                     preferred_element_type=jnp.float32))
        o = jnp.concatenate(head_outs, axis=-1)       # (B*L, D)
        x = x + jnp.dot(_bf16(o), wo_ref[li],
                        preferred_element_type=jnp.float32) + bo

        # ---- pre-LN MLP with QuickGELU
        h2 = _layernorm(x, ln2_g, ln2_b)
        f = jnp.dot(_bf16(h2), wfc_ref[li],
                    preferred_element_type=jnp.float32) + bfc
        f = f * jax.nn.sigmoid(1.702 * f)             # QuickGELU
        x = x + jnp.dot(_bf16(f), wpr_ref[li],
                        preferred_element_type=jnp.float32) + bpr

    # ---- fused ln_final + EOT-row select + text projection (lane-padded out)
    x_eot = jnp.dot(sel_ref[...], x,                  # (B, B*L) @ (B*L, D) -> (B, D)
                    preferred_element_type=jnp.float32)
    hf = _layernorm(x_eot, lnf_ref[0:1], lnf_ref[1:2])
    out_ref[...] = jnp.dot(_bf16(hf), wproj_ref[...],
                           preferred_element_type=jnp.float32)


# ------------------------------ wrapper ---------------------------------------
def clip_encode_text(tokens, params):
    """Mirrors CLIP.encode_text for integer token ids (B, L) -> (B, EMBED)."""
    bsz, seq = tokens.shape
    d = params["token_embedding"].shape[1]
    embed = params["text_projection"].shape[1]
    embed_pad = ((embed + 127) // 128) * 128
    n = bsz * seq

    # Token embedding lookup + positional embedding (plain-JAX glue).
    x0 = params["token_embedding"][tokens] + params["positional_embedding"]
    x0f = x0.reshape(n, d).astype(jnp.float32)

    # EOT token = highest token id (CLIP convention); one-hot row selector so
    # the gather is a tiny matmul inside the kernel.
    eot_idx = jnp.argmax(tokens, axis=-1)
    sel = jax.nn.one_hot(jnp.arange(bsz) * seq + eot_idx, n, dtype=jnp.float32)

    # Block-diagonal causal mask over all B*L rows (2-D attention, no batch dim
    # inside the kernel).  Finite negative for robustness.
    ridx = jnp.arange(n)
    rb, rp = ridx // seq, ridx % seq
    visible = (rb[:, None] == rb[None, :]) & (rp[None, :] <= rp[:, None])
    mask = jnp.where(visible, 0.0, NEG).astype(jnp.float32)

    # Lane-pad the text projection so the final store is lane-dense; slice back
    # outside the kernel.
    wproj_pad = jnp.zeros((d, embed_pad), jnp.float32)
    wproj_pad = wproj_pad.at[:, :embed].set(params["text_projection"])
    wproj_pad = wproj_pad.astype(jnp.bfloat16)

    inputs = (x0f, sel, mask,
              params["wqkv"], params["wo"], params["wfc"], params["wpr"],
              params["vecs"], params["lnf"], wproj_pad)

    kernel = functools.partial(clip_tower_kernel, heads=H, d=d)
    out = pl.pallas_call(
        kernel,
        out_shape=jax.ShapeDtypeStruct((bsz, embed_pad), jnp.float32),
        in_specs=[pl.BlockSpec(memory_space=pltpu.MemorySpace.VMEM)] * len(inputs),
        out_specs=pl.BlockSpec(memory_space=pltpu.MemorySpace.VMEM),
        compiler_params=pltpu.CompilerParams(vmem_limit_bytes=32 * 1024 * 1024),
    )(*inputs)
    return out[:, :embed]


# --------------------------- deterministic params -----------------------------
def init_params(key):
    keys = jax.random.split(key, 3 + LAYERS)
    scale = HD ** -0.5
    wqkv_l, wo_l, wfc_l, wpr_l, vec_l = [], [], [], [], []
    for li in range(LAYERS):
        lk = jax.random.split(keys[3 + li], 4)
        # Fused QKV weight (D, 3D): columns [0:D)=q, [D:2D)=k, [2D:3D)=v, with
        # heads contiguous HD-wide blocks inside each.  Fold 1/sqrt(hd) into q.
        # NOTE: real CLIP in_proj_weight is (3D, D) packed along dim 0 -> must
        # be transposed (and its q-bias scaled) before using this layout.
        wqkv = (D ** -0.5) * jax.random.normal(lk[0], (D, 3 * D), jnp.float32)
        wqkv = wqkv.at[:, :D].multiply(scale)
        bqkv = jnp.zeros((3 * D,), jnp.float32)        # q part pre-scaled (zero here)

        wo = (D ** -0.5) * jax.random.normal(lk[1], (D, D), jnp.float32)
        wfc = (D ** -0.5) * jax.random.normal(lk[2], (D, 4 * D), jnp.float32)
        wpr = ((4 * D) ** -0.5) * jax.random.normal(lk[3], (4 * D, D), jnp.float32)

        slab = jnp.zeros((VEC_ROWS, VEC_W), jnp.float32)
        slab = slab.at[0, :D].set(1.0)                 # ln1 gamma
        slab = slab.at[2, :D].set(1.0)                 # ln2 gamma
        slab = slab.at[6, :3 * D].set(bqkv)            # fused qkv bias
        # rows 1/3/4/5/7 (ln betas, bo, bpr, bfc) stay zero for synthetic init

        wqkv_l.append(wqkv); wo_l.append(wo); wfc_l.append(wfc); wpr_l.append(wpr)
        vec_l.append(slab)

    return {
        "token_embedding": 0.02 * jax.random.normal(keys[0], (VOCAB, D), jnp.float32),
        "positional_embedding": 0.01 * jax.random.normal(keys[1], (L, D), jnp.float32),
        "text_projection": (D ** -0.5) * jax.random.normal(keys[2], (D, EMBED), jnp.float32),
        "lnf": jnp.stack([jnp.ones((D,), jnp.float32), jnp.zeros((D,), jnp.float32)]),
        # matmul weights stacked over layers and stored in bf16 (MXU-native)
        "wqkv": jnp.stack(wqkv_l).astype(jnp.bfloat16),
        "wo": jnp.stack(wo_l).astype(jnp.bfloat16),
        "wfc": jnp.stack(wfc_l).astype(jnp.bfloat16),
        "wpr": jnp.stack(wpr_l).astype(jnp.bfloat16),
        "vecs": jnp.stack(vec_l),                      # f32 LN params / biases
    }


if __name__ == "__main__":
    # TODO(synk): CLIP's BPE string tokenizer has no Pallas equivalent; we feed
    # pre-tokenized integer ids directly (what encode_text consumes).
    key = jax.random.PRNGKey(0)
    pkey, tkey = jax.random.split(key)
    params = init_params(pkey)

    tokens = jax.random.randint(tkey, (B, L), 1, VOCAB - 1).astype(jnp.int32)
    # place an explicit EOT (highest id) like clip.tokenize would
    tokens = tokens.at[:, L - 2].set(VOCAB - 1)

    emb = jax.block_until_ready(clip_encode_text(tokens, params))
    assert emb.shape == (B, EMBED) and emb.dtype == jnp.float32
    assert bool(jnp.all(jnp.isfinite(emb)))
    print("KERNEL_OK")
</pallas_src>

<mosaic_0001>
module attributes {stable_mosaic.version = 11 : i64} {
  func.func @clip_tower_kernel(%arg0: memref<16x32xf32, #tpu.memory_space<vmem>>, %arg1: memref<2x16xf32, #tpu.memory_space<vmem>>, %arg2: memref<16x16xf32, #tpu.memory_space<vmem>>, %arg3: memref<2x32x96xbf16, #tpu.memory_space<vmem>>, %arg4: memref<2x32x32xbf16, #tpu.memory_space<vmem>>, %arg5: memref<2x32x128xbf16, #tpu.memory_space<vmem>>, %arg6: memref<2x128x32xbf16, #tpu.memory_space<vmem>>, %arg7: memref<2x8x128xf32, #tpu.memory_space<vmem>>, %arg8: memref<2x32xf32, #tpu.memory_space<vmem>>, %arg9: memref<32x128xbf16, #tpu.memory_space<vmem>>, %arg10: memref<2x128xf32, #tpu.memory_space<vmem>>) attributes {dimension_semantics = [], scalar_prefetch = 0 : i64, scratch_operands = 0 : i64, tpu.core_type = #tpu.core_type<tc>} {
    %c0 = arith.constant 0 : index
    %c0_0 = arith.constant 0 : index
    %0 = vector.load %arg0[%c0, %c0_0] : memref<16x32xf32, #tpu.memory_space<vmem>>, vector<16x32xf32>
    %c0_1 = arith.constant 0 : index
    %c0_2 = arith.constant 0 : index
    %1 = vector.load %arg2[%c0_1, %c0_2] : memref<16x16xf32, #tpu.memory_space<vmem>>, vector<16x16xf32>
    %c0_3 = arith.constant 0 : index
    %c0_4 = arith.constant 0 : index
    %c0_5 = arith.constant 0 : index
    %2 = vector.load %arg7[%c0_3, %c0_4, %c0_5] : memref<2x8x128xf32, #tpu.memory_space<vmem>>, vector<1x8x128xf32>
    %3 = vector.shape_cast %2 : vector<1x8x128xf32> to vector<8x128xf32>
    %4 = vector.extract_strided_slice %3 {offsets = [0, 0], sizes = [1, 32], strides = [1, 1]} : vector<8x128xf32> to vector<1x32xf32>
    %5 = vector.extract_strided_slice %3 {offsets = [1, 0], sizes = [1, 32], strides = [1, 1]} : vector<8x128xf32> to vector<1x32xf32>
    %6 = vector.extract_strided_slice %3 {offsets = [2, 0], sizes = [1, 32], strides = [1, 1]} : vector<8x128xf32> to vector<1x32xf32>
    %7 = vector.extract_strided_slice %3 {offsets = [3, 0], sizes = [1, 32], strides = [1, 1]} : vector<8x128xf32> to vector<1x32xf32>
    %8 = vector.extract_strided_slice %3 {offsets = [4, 0], sizes = [1, 32], strides = [1, 1]} : vector<8x128xf32> to vector<1x32xf32>
    %9 = vector.extract_strided_slice %3 {offsets = [5, 0], sizes = [1, 32], strides = [1, 1]} : vector<8x128xf32> to vector<1x32xf32>
    %10 = vector.extract_strided_slice %3 {offsets = [6, 0], sizes = [1, 96], strides = [1, 1]} : vector<8x128xf32> to vector<1x96xf32>
    %11 = vector.extract_strided_slice %3 {offsets = [7, 0], sizes = [1, 128], strides = [1, 1]} : vector<8x128xf32> to vector<1x128xf32>
    %cst = arith.constant dense<0.000000e+00> : vector<16xf32>
    %12 = vector.multi_reduction <add>, %0, %cst [1] : vector<16x32xf32> to vector<16xf32>
    %13 = vector.shape_cast %12 : vector<16xf32> to vector<16x1xf32>
    %cst_6 = arith.constant 3.200000e+01 : f32
    %14 = vector.broadcast %cst_6 : f32 to vector<16x1xf32>
    %15 = arith.divf %13, %14 : vector<16x1xf32>
    %16 = vector.broadcast %15 : vector<16x1xf32> to vector<16x32xf32>
    %17 = arith.subf %0, %16 : vector<16x32xf32>
    %18 = arith.mulf %17, %17 : vector<16x32xf32>
    %cst_7 = arith.constant dense<0.000000e+00> : vector<16xf32>
    %19 = vector.multi_reduction <add>, %18, %cst_7 [1] : vector<16x32xf32> to vector<16xf32>
    %20 = vector.shape_cast %19 : vector<16xf32> to vector<16x1xf32>
    %cst_8 = arith.constant 3.200000e+01 : f32
    %21 = vector.broadcast %cst_8 : f32 to vector<16x1xf32>
    %22 = arith.divf %20, %21 : vector<16x1xf32>
    %23 = vector.broadcast %15 : vector<16x1xf32> to vector<16x32xf32>
    %24 = arith.subf %0, %23 : vector<16x32xf32>
    %cst_9 = arith.constant 9.99999974E-6 : f32
    %25 = vector.broadcast %cst_9 : f32 to vector<16x1xf32>
    %26 = arith.addf %22, %25 : vector<16x1xf32>
    %27 = math.rsqrt %26 : vector<16x1xf32>
    %28 = vector.broadcast %27 : vector<16x1xf32> to vector<16x32xf32>
    %29 = arith.mulf %24, %28 : vector<16x32xf32>
    %30 = vector.broadcast %4 : vector<1x32xf32> to vector<16x32xf32>
    %31 = arith.mulf %29, %30 : vector<16x32xf32>
    %32 = vector.broadcast %5 : vector<1x32xf32> to vector<16x32xf32>
    %33 = arith.addf %31, %32 : vector<16x32xf32>
    %34 = arith.truncf %33 : vector<16x32xf32> to vector<16x32xbf16>
    %c0_10 = arith.constant 0 : index
    %c0_11 = arith.constant 0 : index
    %c0_12 = arith.constant 0 : index
    %35 = vector.load %arg3[%c0_10, %c0_11, %c0_12] : memref<2x32x96xbf16, #tpu.memory_space<vmem>>, vector<1x32x96xbf16>
    %36 = vector.shape_cast %35 : vector<1x32x96xbf16> to vector<32x96xbf16>
    %cst_13 = arith.constant dense<0.000000e+00> : vector<16x96xf32>
    %37 = tpu.matmul %34, %36, %cst_13 {dimension_numbers = #tpu.dot_dimension_numbers<[1], [0], [0], [1], [0, 0, 1, 1], [], []>} : vector<16x32xbf16>, vector<32x96xbf16>, vector<16x96xf32> -> vector<16x96xf32>
    %38 = vector.broadcast %10 : vector<1x96xf32> to vector<16x96xf32>
    %39 = arith.addf %37, %38 : vector<16x96xf32>
    %40 = vector.extract_strided_slice %39 {offsets = [0, 0], sizes = [16, 16], strides = [1, 1]} : vector<16x96xf32> to vector<16x16xf32>
    %41 = vector.extract_strided_slice %39 {offsets = [0, 32], sizes = [16, 16], strides = [1, 1]} : vector<16x96xf32> to vector<16x16xf32>
    %42 = vector.extract_strided_slice %39 {offsets = [0, 64], sizes = [16, 16], strides = [1, 1]} : vector<16x96xf32> to vector<16x16xf32>
    %43 = arith.truncf %40 : vector<16x16xf32> to vector<16x16xbf16>
    %44 = arith.truncf %41 : vector<16x16xf32> to vector<16x16xbf16>
    %cst_14 = arith.constant dense<0.000000e+00> : vector<16x16xf32>
    %45 = tpu.matmul %43, %44, %cst_14 {dimension_numbers = #tpu.dot_dimension_numbers<[1], [1], [0], [0], [0, 0, 1, 0], [], []>} : vector<16x16xbf16>, vector<16x16xbf16>, vector<16x16xf32> -> vector<16x16xf32>
    %46 = arith.addf %45, %1 : vector<16x16xf32>
    %cst_15 = arith.constant dense<0xFF800000> : vector<16xf32>
    %47 = vector.multi_reduction <maximumf>, %46, %cst_15 [1] : vector<16x16xf32> to vector<16xf32>
    %48 = vector.shape_cast %47 : vector<16xf32> to vector<16x1xf32>
    %49 = vector.broadcast %48 : vector<16x1xf32> to vector<16x16xf32>
    %50 = arith.subf %46, %49 : vector<16x16xf32>
    %51 = math.exp %50 : vector<16x16xf32>
    %cst_16 = arith.constant dense<0.000000e+00> : vector<16xf32>
    %52 = vector.multi_reduction <add>, %51, %cst_16 [1] : vector<16x16xf32> to vector<16xf32>
    %53 = vector.shape_cast %52 : vector<16xf32> to vector<16x1xf32>
    %54 = tpu.reciprocal %53 {approx = true} : vector<16x1xf32> -> vector<16x1xf32>
    %55 = vector.broadcast %54 : vector<16x1xf32> to vector<16x16xf32>
    %56 = arith.mulf %51, %55 : vector<16x16xf32>
    %57 = arith.truncf %56 : vector<16x16xf32> to vector<16x16xbf16>
    %58 = arith.truncf %42 : vector<16x16xf32> to vector<16x16xbf16>
    %cst_17 = arith.constant dense<0.000000e+00> : vector<16x16xf32>
    %59 = tpu.matmul %57, %58, %cst_17 {dimension_numbers = #tpu.dot_dimension_numbers<[1], [0], [0], [1], [0, 0, 1, 1], [], []>} : vector<16x16xbf16>, vector<16x16xbf16>, vector<16x16xf32> -> vector<16x16xf32>
    %60 = vector.extract_strided_slice %39 {offsets = [0, 16], sizes = [16, 16], strides = [1, 1]} : vector<16x96xf32> to vector<16x16xf32>
    %61 = vector.extract_strided_slice %39 {offsets = [0, 48], sizes = [16, 16], strides = [1, 1]} : vector<16x96xf32> to vector<16x16xf32>
    %62 = vector.extract_strided_slice %39 {offsets = [0, 80], sizes = [16, 16], strides = [1, 1]} : vector<16x96xf32> to vector<16x16xf32>
    %63 = arith.truncf %60 : vector<16x16xf32> to vector<16x16xbf16>
    %64 = arith.truncf %61 : vector<16x16xf32> to vector<16x16xbf16>
    %cst_18 = arith.constant dense<0.000000e+00> : vector<16x16xf32>
    %65 = tpu.matmul %63, %64, %cst_18 {dimension_numbers = #tpu.dot_dimension_numbers<[1], [1], [0], [0], [0, 0, 1, 0], [], []>} : vector<16x16xbf16>, vector<16x16xbf16>, vector<16x16xf32> -> vector<16x16xf32>
    %66 = arith.addf %65, %1 : vector<16x16xf32>
    %cst_19 = arith.constant dense<0xFF800000> : vector<16xf32>
    %67 = vector.multi_reduction <maximumf>, %66, %cst_19 [1] : vector<16x16xf32> to vector<16xf32>
    %68 = vector.shape_cast %67 : vector<16xf32> to vector<16x1xf32>
    %69 = vector.broadcast %68 : vector<16x1xf32> to vector<16x16xf32>
    %70 = arith.subf %66, %69 : vector<16x16xf32>
    %71 = math.exp %70 : vector<16x16xf32>
    %cst_20 = arith.constant dense<0.000000e+00> : vector<16xf32>
    %72 = vector.multi_reduction <add>, %71, %cst_20 [1] : vector<16x16xf32> to vector<16xf32>
    %73 = vector.shape_cast %72 : vector<16xf32> to vector<16x1xf32>
    %74 = tpu.reciprocal %73 {approx = true} : vector<16x1xf32> -> vector<16x1xf32>
    %75 = vector.broadcast %74 : vector<16x1xf32> to vector<16x16xf32>
    %76 = arith.mulf %71, %75 : vector<16x16xf32>
    %77 = arith.truncf %76 : vector<16x16xf32> to vector<16x16xbf16>
    %78 = arith.truncf %62 : vector<16x16xf32> to vector<16x16xbf16>
    %cst_21 = arith.constant dense<0.000000e+00> : vector<16x16xf32>
    %79 = tpu.matmul %77, %78, %cst_21 {dimension_numbers = #tpu.dot_dimension_numbers<[1], [0], [0], [1], [0, 0, 1, 1], [], []>} : vector<16x16xbf16>, vector<16x16xbf16>, vector<16x16xf32> -> vector<16x16xf32>
    %80 = tpu.concatenate %59, %79 in 1 : vector<16x16xf32>, vector<16x16xf32> -> vector<16x32xf32>
    %81 = arith.truncf %80 : vector<16x32xf32> to vector<16x32xbf16>
    %c0_22 = arith.constant 0 : index
    %c0_23 = arith.constant 0 : index
    %c0_24 = arith.constant 0 : index
    %82 = vector.load %arg4[%c0_22, %c0_23, %c0_24] : memref<2x32x32xbf16, #tpu.memory_space<vmem>>, vector<1x32x32xbf16>
    %83 = vector.shape_cast %82 : vector<1x32x32xbf16> to vector<32x32xbf16>
    %cst_25 = arith.constant dense<0.000000e+00> : vector<16x32xf32>
    %84 = tpu.matmul %81, %83, %cst_25 {dimension_numbers = #tpu.dot_dimension_numbers<[1], [0], [0], [1], [0, 0, 1, 1], [], []>} : vector<16x32xbf16>, vector<32x32xbf16>, vector<16x32xf32> -> vector<16x32xf32>
    %85 = arith.addf %0, %84 : vector<16x32xf32>
    %86 = vector.broadcast %8 : vector<1x32xf32> to vector<16x32xf32>
    %87 = arith.addf %85, %86 : vector<16x32xf32>
    %cst_26 = arith.constant dense<0.000000e+00> : vector<16xf32>
    %88 = vector.multi_reduction <add>, %87, %cst_26 [1] : vector<16x32xf32> to vector<16xf32>
    %89 = vector.shape_cast %88 : vector<16xf32> to vector<16x1xf32>
    %cst_27 = arith.constant 3.200000e+01 : f32
    %90 = vector.broadcast %cst_27 : f32 to vector<16x1xf32>
    %91 = arith.divf %89, %90 : vector<16x1xf32>
    %92 = vector.broadcast %91 : vector<16x1xf32> to vector<16x32xf32>
    %93 = arith.subf %87, %92 : vector<16x32xf32>
    %94 = arith.mulf %93, %93 : vector<16x32xf32>
    %cst_28 = arith.constant dense<0.000000e+00> : vector<16xf32>
    %95 = vector.multi_reduction <add>, %94, %cst_28 [1] : vector<16x32xf32> to vector<16xf32>
    %96 = vector.shape_cast %95 : vector<16xf32> to vector<16x1xf32>
    %cst_29 = arith.constant 3.200000e+01 : f32
    %97 = vector.broadcast %cst_29 : f32 to vector<16x1xf32>
    %98 = arith.divf %96, %97 : vector<16x1xf32>
    %99 = vector.broadcast %91 : vector<16x1xf32> to vector<16x32xf32>
    %100 = arith.subf %87, %99 : vector<16x32xf32>
    %cst_30 = arith.constant 9.99999974E-6 : f32
    %101 = vector.broadcast %cst_30 : f32 to vector<16x1xf32>
    %102 = arith.addf %98, %101 : vector<16x1xf32>
    %103 = math.rsqrt %102 : vector<16x1xf32>
    %104 = vector.broadcast %103 : vector<16x1xf32> to vector<16x32xf32>
    %105 = arith.mulf %100, %104 : vector<16x32xf32>
    %106 = vector.broadcast %6 : vector<1x32xf32> to vector<16x32xf32>
    %107 = arith.mulf %105, %106 : vector<16x32xf32>
    %108 = vector.broadcast %7 : vector<1x32xf32> to vector<16x32xf32>
    %109 = arith.addf %107, %108 : vector<16x32xf32>
    %110 = arith.truncf %109 : vector<16x32xf32> to vector<16x32xbf16>
    %c0_31 = arith.constant 0 : index
    %c0_32 = arith.constant 0 : index
    %c0_33 = arith.constant 0 : index
    %111 = vector.load %arg5[%c0_31, %c0_32, %c0_33] : memref<2x32x128xbf16, #tpu.memory_space<vmem>>, vector<1x32x128xbf16>
    %112 = vector.shape_cast %111 : vector<1x32x128xbf16> to vector<32x128xbf16>
    %cst_34 = arith.constant dense<0.000000e+00> : vector<16x128xf32>
    %113 = tpu.matmul %110, %112, %cst_34 {dimension_numbers = #tpu.dot_dimension_numbers<[1], [0], [0], [1], [0, 0, 1, 1], [], []>} : vector<16x32xbf16>, vector<32x128xbf16>, vector<16x128xf32> -> vector<16x128xf32>
    %114 = vector.broadcast %11 : vector<1x128xf32> to vector<16x128xf32>
    %115 = arith.addf %113, %114 : vector<16x128xf32>
    %cst_35 = arith.constant 1.702000e+00 : f32
    %116 = vector.broadcast %cst_35 : f32 to vector<16x128xf32>
    %117 = arith.mulf %116, %115 : vector<16x128xf32>
    %118 = arith.negf %117 : vector<16x128xf32>
    %119 = math.exp %118 : vector<16x128xf32>
    %cst_36 = arith.constant 1.000000e+00 : f32
    %120 = vector.broadcast %cst_36 : f32 to vector<16x128xf32>
    %121 = arith.addf %120, %119 : vector<16x128xf32>
    %122 = arith.divf %120, %121 : vector<16x128xf32>
    %123 = arith.mulf %115, %122 : vector<16x128xf32>
    %124 = arith.truncf %123 : vector<16x128xf32> to vector<16x128xbf16>
    %c0_37 = arith.constant 0 : index
    %c0_38 = arith.constant 0 : index
    %c0_39 = arith.constant 0 : index
    %125 = vector.load %arg6[%c0_37, %c0_38, %c0_39] : memref<2x128x32xbf16, #tpu.memory_space<vmem>>, vector<1x128x32xbf16>
    %126 = vector.shape_cast %125 : vector<1x128x32xbf16> to vector<128x32xbf16>
    %cst_40 = arith.constant dense<0.000000e+00> : vector<16x32xf32>
    %127 = tpu.matmul %124, %126, %cst_40 {dimension_numbers = #tpu.dot_dimension_numbers<[1], [0], [0], [1], [0, 0, 1, 1], [], []>} : vector<16x128xbf16>, vector<128x32xbf16>, vector<16x32xf32> -> vector<16x32xf32>
    %128 = arith.addf %87, %127 : vector<16x32xf32>
    %129 = vector.broadcast %9 : vector<1x32xf32> to vector<16x32xf32>
    %130 = arith.addf %128, %129 : vector<16x32xf32>
    %c1 = arith.constant 1 : index
    %c0_41 = arith.constant 0 : index
    %c0_42 = arith.constant 0 : index
    %131 = vector.load %arg7[%c1, %c0_41, %c0_42] : memref<2x8x128xf32, #tpu.memory_space<vmem>>, vector<1x8x128xf32>
    %132 = vector.shape_cast %131 : vector<1x8x128xf32> to vector<8x128xf32>
    %133 = vector.extract_strided_slice %132 {offsets = [0, 0], sizes = [1, 32], strides = [1, 1]} : vector<8x128xf32> to vector<1x32xf32>
    %134 = vector.extract_strided_slice %132 {offsets = [1, 0], sizes = [1, 32], strides = [1, 1]} : vector<8x128xf32> to vector<1x32xf32>
    %135 = vector.extract_strided_slice %132 {offsets = [2, 0], sizes = [1, 32], strides = [1, 1]} : vector<8x128xf32> to vector<1x32xf32>
    %136 = vector.extract_strided_slice %132 {offsets = [3, 0], sizes = [1, 32], strides = [1, 1]} : vector<8x128xf32> to vector<1x32xf32>
    %137 = vector.extract_strided_slice %132 {offsets = [4, 0], sizes = [1, 32], strides = [1, 1]} : vector<8x128xf32> to vector<1x32xf32>
    %138 = vector.extract_strided_slice %132 {offsets = [5, 0], sizes = [1, 32], strides = [1, 1]} : vector<8x128xf32> to vector<1x32xf32>
    %139 = vector.extract_strided_slice %132 {offsets = [6, 0], sizes = [1, 96], strides = [1, 1]} : vector<8x128xf32> to vector<1x96xf32>
    %140 = vector.extract_strided_slice %132 {offsets = [7, 0], sizes = [1, 128], strides = [1, 1]} : vector<8x128xf32> to vector<1x128xf32>
    %cst_43 = arith.constant dense<0.000000e+00> : vector<16xf32>
    %141 = vector.multi_reduction <add>, %130, %cst_43 [1] : vector<16x32xf32> to vector<16xf32>
    %142 = vector.shape_cast %141 : vector<16xf32> to vector<16x1xf32>
    %cst_44 = arith.constant 3.200000e+01 : f32
    %143 = vector.broadcast %cst_44 : f32 to vector<16x1xf32>
    %144 = arith.divf %142, %143 : vector<16x1xf32>
    %145 = vector.broadcast %144 : vector<16x1xf32> to vector<16x32xf32>
    %146 = arith.subf %130, %145 : vector<16x32xf32>
    %147 = arith.mulf %146, %146 : vector<16x32xf32>
    %cst_45 = arith.constant dense<0.000000e+00> : vector<16xf32>
    %148 = vector.multi_reduction <add>, %147, %cst_45 [1] : vector<16x32xf32> to vector<16xf32>
    %149 = vector.shape_cast %148 : vector<16xf32> to vector<16x1xf32>
    %cst_46 = arith.constant 3.200000e+01 : f32
    %150 = vector.broadcast %cst_46 : f32 to vector<16x1xf32>
    %151 = arith.divf %149, %150 : vector<16x1xf32>
    %152 = vector.broadcast %144 : vector<16x1xf32> to vector<16x32xf32>
    %153 = arith.subf %130, %152 : vector<16x32xf32>
    %cst_47 = arith.constant 9.99999974E-6 : f32
    %154 = vector.broadcast %cst_47 : f32 to vector<16x1xf32>
    %155 = arith.addf %151, %154 : vector<16x1xf32>
    %156 = math.rsqrt %155 : vector<16x1xf32>
    %157 = vector.broadcast %156 : vector<16x1xf32> to vector<16x32xf32>
    %158 = arith.mulf %153, %157 : vector<16x32xf32>
    %159 = vector.broadcast %133 : vector<1x32xf32> to vector<16x32xf32>
    %160 = arith.mulf %158, %159 : vector<16x32xf32>
    %161 = vector.broadcast %134 : vector<1x32xf32> to vector<16x32xf32>
    %162 = arith.addf %160, %161 : vector<16x32xf32>
    %163 = arith.truncf %162 : vector<16x32xf32> to vector<16x32xbf16>
    %c1_48 = arith.constant 1 : index
    %c0_49 = arith.constant 0 : index
    %c0_50 = arith.constant 0 : index
    %164 = vector.load %arg3[%c1_48, %c0_49, %c0_50] : memref<2x32x96xbf16, #tpu.memory_space<vmem>>, vector<1x32x96xbf16>
    %165 = vector.shape_cast %164 : vector<1x32x96xbf16> to vector<32x96xbf16>
    %cst_51 = arith.constant dense<0.000000e+00> : vector<16x96xf32>
    %166 = tpu.matmul %163, %165, %cst_51 {dimension_numbers = #tpu.dot_dimension_numbers<[1], [0], [0], [1], [0, 0, 1, 1], [], []>} : vector<16x32xbf16>, vector<32x96xbf16>, vector<16x96xf32> -> vector<16x96xf32>
    %167 = vector.broadcast %139 : vector<1x96xf32> to vector<16x96xf32>
    %168 = arith.addf %166, %167 : vector<16x96xf32>
    %169 = vector.extract_strided_slice %168 {offsets = [0, 0], sizes = [16, 16], strides = [1, 1]} : vector<16x96xf32> to vector<16x16xf32>
    %170 = vector.extract_strided_slice %168 {offsets = [0, 32], sizes = [16, 16], strides = [1, 1]} : vector<16x96xf32> to vector<16x16xf32>
    %171 = vector.extract_strided_slice %168 {offsets = [0, 64], sizes = [16, 16], strides = [1, 1]} : vector<16x96xf32> to vector<16x16xf32>
    %172 = arith.truncf %169 : vector<16x16xf32> to vector<16x16xbf16>
    %173 = arith.truncf %170 : vector<16x16xf32> to vector<16x16xbf16>
    %cst_52 = arith.constant dense<0.000000e+00> : vector<16x16xf32>
    %174 = tpu.matmul %172, %173, %cst_52 {dimension_numbers = #tpu.dot_dimension_numbers<[1], [1], [0], [0], [0, 0, 1, 0], [], []>} : vector<16x16xbf16>, vector<16x16xbf16>, vector<16x16xf32> -> vector<16x16xf32>
    %175 = arith.addf %174, %1 : vector<16x16xf32>
    %cst_53 = arith.constant dense<0xFF800000> : vector<16xf32>
    %176 = vector.multi_reduction <maximumf>, %175, %cst_53 [1] : vector<16x16xf32> to vector<16xf32>
    %177 = vector.shape_cast %176 : vector<16xf32> to vector<16x1xf32>
    %178 = vector.broadcast %177 : vector<16x1xf32> to vector<16x16xf32>
    %179 = arith.subf %175, %178 : vector<16x16xf32>
    %180 = math.exp %179 : vector<16x16xf32>
    %cst_54 = arith.constant dense<0.000000e+00> : vector<16xf32>
    %181 = vector.multi_reduction <add>, %180, %cst_54 [1] : vector<16x16xf32> to vector<16xf32>
    %182 = vector.shape_cast %181 : vector<16xf32> to vector<16x1xf32>
    %183 = tpu.reciprocal %182 {approx = true} : vector<16x1xf32> -> vector<16x1xf32>
    %184 = vector.broadcast %183 : vector<16x1xf32> to vector<16x16xf32>
    %185 = arith.mulf %180, %184 : vector<16x16xf32>
    %186 = arith.truncf %185 : vector<16x16xf32> to vector<16x16xbf16>
    %187 = arith.truncf %171 : vector<16x16xf32> to vector<16x16xbf16>
    %cst_55 = arith.constant dense<0.000000e+00> : vector<16x16xf32>
    %188 = tpu.matmul %186, %187, %cst_55 {dimension_numbers = #tpu.dot_dimension_numbers<[1], [0], [0], [1], [0, 0, 1, 1], [], []>} : vector<16x16xbf16>, vector<16x16xbf16>, vector<16x16xf32> -> vector<16x16xf32>
    %189 = vector.extract_strided_slice %168 {offsets = [0, 16], sizes = [16, 16], strides = [1, 1]} : vector<16x96xf32> to vector<16x16xf32>
    %190 = vector.extract_strided_slice %168 {offsets = [0, 48], sizes = [16, 16], strides = [1, 1]} : vector<16x96xf32> to vector<16x16xf32>
    %191 = vector.extract_strided_slice %168 {offsets = [0, 80], sizes = [16, 16], strides = [1, 1]} : vector<16x96xf32> to vector<16x16xf32>
    %192 = arith.truncf %189 : vector<16x16xf32> to vector<16x16xbf16>
    %193 = arith.truncf %190 : vector<16x16xf32> to vector<16x16xbf16>
    %cst_56 = arith.constant dense<0.000000e+00> : vector<16x16xf32>
    %194 = tpu.matmul %192, %193, %cst_56 {dimension_numbers = #tpu.dot_dimension_numbers<[1], [1], [0], [0], [0, 0, 1, 0], [], []>} : vector<16x16xbf16>, vector<16x16xbf16>, vector<16x16xf32> -> vector<16x16xf32>
    %195 = arith.addf %194, %1 : vector<16x16xf32>
    %cst_57 = arith.constant dense<0xFF800000> : vector<16xf32>
    %196 = vector.multi_reduction <maximumf>, %195, %cst_57 [1] : vector<16x16xf32> to vector<16xf32>
    %197 = vector.shape_cast %196 : vector<16xf32> to vector<16x1xf32>
    %198 = vector.broadcast %197 : vector<16x1xf32> to vector<16x16xf32>
    %199 = arith.subf %195, %198 : vector<16x16xf32>
    %200 = math.exp %199 : vector<16x16xf32>
    %cst_58 = arith.constant dense<0.000000e+00> : vector<16xf32>
    %201 = vector.multi_reduction <add>, %200, %cst_58 [1] : vector<16x16xf32> to vector<16xf32>
    %202 = vector.shape_cast %201 : vector<16xf32> to vector<16x1xf32>
    %203 = tpu.reciprocal %202 {approx = true} : vector<16x1xf32> -> vector<16x1xf32>
    %204 = vector.broadcast %203 : vector<16x1xf32> to vector<16x16xf32>
    %205 = arith.mulf %200, %204 : vector<16x16xf32>
    %206 = arith.truncf %205 : vector<16x16xf32> to vector<16x16xbf16>
    %207 = arith.truncf %191 : vector<16x16xf32> to vector<16x16xbf16>
    %cst_59 = arith.constant dense<0.000000e+00> : vector<16x16xf32>
    %208 = tpu.matmul %206, %207, %cst_59 {dimension_numbers = #tpu.dot_dimension_numbers<[1], [0], [0], [1], [0, 0, 1, 1], [], []>} : vector<16x16xbf16>, vector<16x16xbf16>, vector<16x16xf32> -> vector<16x16xf32>
    %209 = tpu.concatenate %188, %208 in 1 : vector<16x16xf32>, vector<16x16xf32> -> vector<16x32xf32>
    %210 = arith.truncf %209 : vector<16x32xf32> to vector<16x32xbf16>
    %c1_60 = arith.constant 1 : index
    %c0_61 = arith.constant 0 : index
    %c0_62 = arith.constant 0 : index
    %211 = vector.load %arg4[%c1_60, %c0_61, %c0_62] : memref<2x32x32xbf16, #tpu.memory_space<vmem>>, vector<1x32x32xbf16>
    %212 = vector.shape_cast %211 : vector<1x32x32xbf16> to vector<32x32xbf16>
    %cst_63 = arith.constant dense<0.000000e+00> : vector<16x32xf32>
    %213 = tpu.matmul %210, %212, %cst_63 {dimension_numbers = #tpu.dot_dimension_numbers<[1], [0], [0], [1], [0, 0, 1, 1], [], []>} : vector<16x32xbf16>, vector<32x32xbf16>, vector<16x32xf32> -> vector<16x32xf32>
    %214 = arith.addf %130, %213 : vector<16x32xf32>
    %215 = vector.broadcast %137 : vector<1x32xf32> to vector<16x32xf32>
    %216 = arith.addf %214, %215 : vector<16x32xf32>
    %cst_64 = arith.constant dense<0.000000e+00> : vector<16xf32>
    %217 = vector.multi_reduction <add>, %216, %cst_64 [1] : vector<16x32xf32> to vector<16xf32>
    %218 = vector.shape_cast %217 : vector<16xf32> to vector<16x1xf32>
    %cst_65 = arith.constant 3.200000e+01 : f32
    %219 = vector.broadcast %cst_65 : f32 to vector<16x1xf32>
    %220 = arith.divf %218, %219 : vector<16x1xf32>
    %221 = vector.broadcast %220 : vector<16x1xf32> to vector<16x32xf32>
    %222 = arith.subf %216, %221 : vector<16x32xf32>
    %223 = arith.mulf %222, %222 : vector<16x32xf32>
    %cst_66 = arith.constant dense<0.000000e+00> : vector<16xf32>
    %224 = vector.multi_reduction <add>, %223, %cst_66 [1] : vector<16x32xf32> to vector<16xf32>
    %225 = vector.shape_cast %224 : vector<16xf32> to vector<16x1xf32>
    %cst_67 = arith.constant 3.200000e+01 : f32
    %226 = vector.broadcast %cst_67 : f32 to vector<16x1xf32>
    %227 = arith.divf %225, %226 : vector<16x1xf32>
    %228 = vector.broadcast %220 : vector<16x1xf32> to vector<16x32xf32>
    %229 = arith.subf %216, %228 : vector<16x32xf32>
    %cst_68 = arith.constant 9.99999974E-6 : f32
    %230 = vector.broadcast %cst_68 : f32 to vector<16x1xf32>
    %231 = arith.addf %227, %230 : vector<16x1xf32>
    %232 = math.rsqrt %231 : vector<16x1xf32>
    %233 = vector.broadcast %232 : vector<16x1xf32> to vector<16x32xf32>
    %234 = arith.mulf %229, %233 : vector<16x32xf32>
    %235 = vector.broadcast %135 : vector<1x32xf32> to vector<16x32xf32>
    %236 = arith.mulf %234, %235 : vector<16x32xf32>
    %237 = vector.broadcast %136 : vector<1x32xf32> to vector<16x32xf32>
    %238 = arith.addf %236, %237 : vector<16x32xf32>
    %239 = arith.truncf %238 : vector<16x32xf32> to vector<16x32xbf16>
    %c1_69 = arith.constant 1 : index
    %c0_70 = arith.constant 0 : index
    %c0_71 = arith.constant 0 : index
    %240 = vector.load %arg5[%c1_69, %c0_70, %c0_71] : memref<2x32x128xbf16, #tpu.memory_space<vmem>>, vector<1x32x128xbf16>
    %241 = vector.shape_cast %240 : vector<1x32x128xbf16> to vector<32x128xbf16>
    %cst_72 = arith.constant dense<0.000000e+00> : vector<16x128xf32>
    %242 = tpu.matmul %239, %241, %cst_72 {dimension_numbers = #tpu.dot_dimension_numbers<[1], [0], [0], [1], [0, 0, 1, 1], [], []>} : vector<16x32xbf16>, vector<32x128xbf16>, vector<16x128xf32> -> vector<16x128xf32>
    %243 = vector.broadcast %140 : vector<1x128xf32> to vector<16x128xf32>
    %244 = arith.addf %242, %243 : vector<16x128xf32>
    %cst_73 = arith.constant 1.702000e+00 : f32
    %245 = vector.broadcast %cst_73 : f32 to vector<16x128xf32>
    %246 = arith.mulf %245, %244 : vector<16x128xf32>
    %247 = arith.negf %246 : vector<16x128xf32>
    %248 = math.exp %247 : vector<16x128xf32>
    %cst_74 = arith.constant 1.000000e+00 : f32
    %249 = vector.broadcast %cst_74 : f32 to vector<16x128xf32>
    %250 = arith.addf %249, %248 : vector<16x128xf32>
    %251 = arith.divf %249, %250 : vector<16x128xf32>
    %252 = arith.mulf %244, %251 : vector<16x128xf32>
    %253 = arith.truncf %252 : vector<16x128xf32> to vector<16x128xbf16>
    %c1_75 = arith.constant 1 : index
    %c0_76 = arith.constant 0 : index
    %c0_77 = arith.constant 0 : index
    %254 = vector.load %arg6[%c1_75, %c0_76, %c0_77] : memref<2x128x32xbf16, #tpu.memory_space<vmem>>, vector<1x128x32xbf16>
    %255 = vector.shape_cast %254 : vector<1x128x32xbf16> to vector<128x32xbf16>
    %cst_78 = arith.constant dense<0.000000e+00> : vector<16x32xf32>
    %256 = tpu.matmul %253, %255, %cst_78 {dimension_numbers = #tpu.dot_dimension_numbers<[1], [0], [0], [1], [0, 0, 1, 1], [], []>} : vector<16x128xbf16>, vector<128x32xbf16>, vector<16x32xf32> -> vector<16x32xf32>
    %257 = arith.addf %216, %256 : vector<16x32xf32>
    %258 = vector.broadcast %138 : vector<1x32xf32> to vector<16x32xf32>
    %259 = arith.addf %257, %258 : vector<16x32xf32>
    %c0_79 = arith.constant 0 : index
    %c0_80 = arith.constant 0 : index
    %260 = vector.load %arg1[%c0_79, %c0_80] : memref<2x16xf32, #tpu.memory_space<vmem>>, vector<2x16xf32>
    %cst_81 = arith.constant dense<0.000000e+00> : vector<2x32xf32>
    %261 = tpu.matmul %260, %259, %cst_81 {dimension_numbers = #tpu.dot_dimension_numbers<[1], [0], [0], [1], [0, 0, 1, 1], [], []>} : vector<2x16xf32>, vector<16x32xf32>, vector<2x32xf32> -> vector<2x32xf32>
    %c0_82 = arith.constant 0 : index
    %c0_83 = arith.constant 0 : index
    %262 = vector.load %arg8[%c0_82, %c0_83] : memref<2x32xf32, #tpu.memory_space<vmem>>, vector<1x32xf32>
    %c1_84 = arith.constant 1 : index
    %c0_85 = arith.constant 0 : index
    %263 = vector.load %arg8[%c1_84, %c0_85] : memref<2x32xf32, #tpu.memory_space<vmem>>, vector<1x32xf32>
    %cst_86 = arith.constant dense<0.000000e+00> : vector<2xf32>
    %264 = vector.multi_reduction <add>, %261, %cst_86 [1] : vector<2x32xf32> to vector<2xf32>
    %265 = vector.shape_cast %264 : vector<2xf32> to vector<2x1xf32>
    %cst_87 = arith.constant 3.200000e+01 : f32
    %266 = vector.broadcast %cst_87 : f32 to vector<2x1xf32>
    %267 = arith.divf %265, %266 : vector<2x1xf32>
    %268 = vector.broadcast %267 : vector<2x1xf32> to vector<2x32xf32>
    %269 = arith.subf %261, %268 : vector<2x32xf32>
    %270 = arith.mulf %269, %269 : vector<2x32xf32>
    %cst_88 = arith.constant dense<0.000000e+00> : vector<2xf32>
    %271 = vector.multi_reduction <add>, %270, %cst_88 [1] : vector<2x32xf32> to vector<2xf32>
    %272 = vector.shape_cast %271 : vector<2xf32> to vector<2x1xf32>
    %cst_89 = arith.constant 3.200000e+01 : f32
    %273 = vector.broadcast %cst_89 : f32 to vector<2x1xf32>
    %274 = arith.divf %272, %273 : vector<2x1xf32>
    %275 = vector.broadcast %267 : vector<2x1xf32> to vector<2x32xf32>
    %276 = arith.subf %261, %275 : vector<2x32xf32>
    %cst_90 = arith.constant 9.99999974E-6 : f32
    %277 = vector.broadcast %cst_90 : f32 to vector<2x1xf32>
    %278 = arith.addf %274, %277 : vector<2x1xf32>
    %279 = math.rsqrt %278 : vector<2x1xf32>
    %280 = vector.broadcast %279 : vector<2x1xf32> to vector<2x32xf32>
    %281 = arith.mulf %276, %280 : vector<2x32xf32>
    %282 = vector.broadcast %262 : vector<1x32xf32> to vector<2x32xf32>
    %283 = arith.mulf %281, %282 : vector<2x32xf32>
    %284 = vector.broadcast %263 : vector<1x32xf32> to vector<2x32xf32>
    %285 = arith.addf %283, %284 : vector<2x32xf32>
    %286 = arith.truncf %285 : vector<2x32xf32> to vector<2x32xbf16>
    %c0_91 = arith.constant 0 : index
    %c0_92 = arith.constant 0 : index
    %287 = vector.load %arg9[%c0_91, %c0_92] : memref<32x128xbf16, #tpu.memory_space<vmem>>, vector<32x128xbf16>
    %cst_93 = arith.constant dense<0.000000e+00> : vector<2x128xf32>
    %288 = tpu.matmul %286, %287, %cst_93 {dimension_numbers = #tpu.dot_dimension_numbers<[1], [0], [0], [1], [0, 0, 1, 1], [], []>} : vector<2x32xbf16>, vector<32x128xbf16>, vector<2x128xf32> -> vector<2x128xf32>
    %c0_94 = arith.constant 0 : index
    %c0_95 = arith.constant 0 : index
    %289 = vector.load %arg10[%c0_94, %c0_95] : memref<2x128xf32, #tpu.memory_space<vmem>>, vector<2x128xf32>
    tpu.vector_store %arg10[%c0_94, %c0_95], %288 {strides = array<i32>} : memref<2x128xf32, #tpu.memory_space<vmem>>, vector<2x128xf32>,
    return
  }
}

</mosaic_0001>

<bundles_post_ra>
// kernel: tpu_custom_call.1
= control target key start
LH: loop header
LB: loop body
LE: loop exit
PB: predicated region body
PF: predicated region fallthrough
CT: control target
= control target key end

     0   :  { %15 = vsyncpa [#allocation3], 0  ;;  %s2462_s0 = inlined_call_operand.vmem [shape: f32[16,32], index: 0, kind: input, shape index: {}]   ;;  %s2463_s1 = inlined_call_operand.hbm [shape: f32[2,16], index: 1, kind: input, shape index: {}]   ;;  %s2464_s2 = inlined_call_operand.vmem [shape: f32[16,16], index: 2, kind: input, shape index: {}]   ;;  %s2465_s3 = inlined_call_operand.vmem [shape: bf16[2,32,96], index: 3, kind: input, shape index: {}]   ;;  %s2466_s4 = inlined_call_operand.vmem [shape: bf16[2,32,32], index: 4, kind: input, shape index: {}]   ;;  %s2467_s5 = inlined_call_operand.vmem [shape: bf16[2,32,128], index: 5, kind: input, shape index: {}]   ;;  %s2468_s6 = inlined_call_operand.vmem [shape: bf16[2,128,32], index: 6, kind: input, shape index: {}]   ;;  %s2469_s7 = inlined_call_operand.vmem [shape: f32[2,8,128], index: 7, kind: input, shape index: {}]   ;;  %s2470_s8 = inlined_call_operand.vmem [shape: f32[2,32], index: 8, kind: input, shape index: {}]   ;;  %s2471_s9 = inlined_call_operand.vmem [shape: bf16[32,128], index: 9, kind: input, shape index: {}]   ;;  %s2472_s10 = inlined_call_operand.hbm [shape: f32[2,128], index: 10, kind: output, shape index: {}]  }
   0x1   :  { %16 = vsyncpa [#allocation4], 0  ;;  %s2003_s13 = smov [#allocation2]  }
   0x2   :  { %s25_s14 = sshll.u32 %s2003_s13, 4  ;;  %s26_s14 = int_to_ptr.vmem [resolvable:$true] %s25_s14 }
   0x3   :  { %s1967_s15 = scalar_lea.vmem %s26_s14, 32  ;;  %p1972_p1 = scmp.lt.s32.totalorder %s26_s14, %s26_s14 }
   0x4   :  { %p1968_p0 = scmp.ne.s32.totalorder %s26_s14, %s1967_s15  ;;  %p1973_p2 = scmp.lt.s32.totalorder %s1967_s15, %s1967_s15 }
   0x6   :  { %p1974_p3 = por %p1973_p2, %p1972_p1 }
   0x8   :  { %p1975_p4 = pnand %p1974_p3, %p1968_p0 }
   0xa   :  { %1978 = shalt.err (!%p1975_p4)
}
   0xb   :  { %28 = dma.hbm_to_vmem [thread:$0]  %s2463_s1, 32, %s26_s14, [#allocation3]  }
   0xc   :  { %1999 = dma.done.wait [#allocation3], 32  }
   0xd   :  { %2000 = vsyncadd [#allocation3], 4294967264  ;;  %vm54_vm0 = vcmask 261120   ;;  %v2074_v0 = vld [vmem:[%s2462_s0] sm:$0xff]  ;;  %v2079_v1 = vld [vmem:[%s2462_s0 + $0x8] sm:$0xff]  ;;  %v2004_v15 = vmov 0.0   ;;  %v82_v23 = vlaneseq }
   0xe   :  { %v55_v2 = vsel %vm54_vm0, %v2074_v0, 0.0  ;;  %v58_v3 = vsel %vm54_vm0, %v2079_v1, 0.0  ;;  %v1863_v14 = vld [vmem:[%s2465_s3 + $0x8] sm:$0xff]   ;;  %1692 = vmatprep.subr.bf16.mxu1 %v2004_v15  ;;  %vm2005_vm1 = vmmov 0   ;;  %v1864_v16 = vld [vmem:[%s2465_s3] sm:$0xff]   ;;  %1706 = vmatprep.subr.bf16.mxu0 %v2004_v15  ;;  %s2006_s26 = smov 80  }
   0xf   :  { %56 = vadd.xlane.f32.xlu0 %v55_v2  ;;  %1696 = vmatprep.mubr.msk.bf16.mxu1 %vm2005_vm1, %v2004_v15  ;;  %v2103_v24 = vshrl.u32 %v82_v23, 7  ;;  %v2109_v26 = vld [vmem:[%s2469_s7] sm:$0xff]  ;;  %s2007_s27 = smov 96   ;;  %s2008_s28 = smov 112   ;;  %vm163_vm2 = vcmask 130048   ;;  %v2153_v57 = vld [vmem:[%s2464_s2 + $0x8] sm:$0xff] }
  0x10   :  { %1693 = vmatpush3.bf16.msra.mxu1 %v1863_v14  ;;  %1708 = vmatprep.mubr.msk.bf16.mxu0 %vm2005_vm1, %v2004_v15  ;;  %v2147_v53 = vld [vmem:[%s2464_s2] sm:$0xff]  ;;  %s2009_s2 = smov 64   ;;  %s2010_s13 = smov 48   ;;  %vm1453_vm3 = vcmask 254976  }
  0x11   :  { %1694 = vmatprep.subr.bf16.mxu1 %v2004_v15  ;;  %v84_v25 = vsub.s32 0, %v2103_v24  ;;  %v90_v30 = vsub.s32 1, %v2103_v24  ;;  %v101_v39 = vsub.s32 6, %v2103_v24  ;;  %s2011_s18 = smov 16  }
  0x13   :  { %59 = vadd.xlane.f32.xlu0 %v58_v3  ;;  %v85_v29 = vrot.slane %v2109_v26, %v84_v25  ;;  %v91_v34 = vrot.slane %v2109_v26, %v90_v30  ;;  %v102_v41 = vrot.slane %v2109_v26, %v101_v39 }
  0x14   :  { %1695 = vmatpush3.bf16.msra.mxu1 %v1864_v16 }
  0x15   :  { %1700 = vmatprep.subr.bf16.mxu1 %v2004_v15 }
  0x98   :  { %v57_v4 = vpop.xlane.xlu0 %56 }
  0x99   :  { %v62_v5 = vmul.f32 0.03125, %v57_v4 }
  0x9b   :  { %v64_v6 = vsub.f32 %v2074_v0, %v62_v5 }
  0x9c   :  { %v60_v7 = vpop.xlane.xlu0 %59 }
  0x9d   :  { %v63_v8 = vmul.f32 0.03125, %v60_v7  ;;  %v66_v9 = vmul.f32 %v64_v6, %v64_v6 }
  0x9f   :  { %v65_v10 = vsub.f32 %v2079_v1, %v63_v8  ;;  %v68_v11 = vsel %vm54_vm0, %v66_v9, 0.0 }
  0xa0   :  { %69 = vadd.xlane.f32.xlu1 %v68_v11 }
  0xa1   :  { %v67_v12 = vmul.f32 %v65_v10, %v65_v10 }
  0xa3   :  { %v71_v13 = vsel %vm54_vm0, %v67_v12, 0.0 }
  0xa4   :  { %72 = vadd.xlane.f32.xlu1 %v71_v13 }
 0x129   :  { %v70_v17 = vpop.xlane.xlu1 %69 }
 0x12a   :  { %v74_v18 = vmul.f32 0.03125, %v70_v17 }
 0x12c   :  { %v76_v19 = vadd.f32 1e-05, %v74_v18 }
 0x12d   :  { %v73_v20 = vpop.xlane.xlu1 %72 }
 0x12e   :  { %1893 = vrsqrt.f32 %v76_v19  ;;  %v75_v21 = vmul.f32 0.03125, %v73_v20 }
 0x130   :  { %v77_v22 = vadd.f32 1e-05, %v75_v21 }
 0x132   :  { %1895 = vrsqrt.f32 %v77_v22 }
 0x13b   :  { %v1894_v27 = vpop.eup %1893 }
 0x13c   :  { %v80_v28 = vmul.f32 %v1894_v27, %v64_v6 }
 0x13e   :  { %v86_v33 = vmul.f32 %v85_v29, %v80_v28 }
 0x13f   :  { %v1896_v31 = vpop.eup %1895 }
 0x140   :  { %v81_v32 = vmul.f32 %v1896_v31, %v65_v10  ;;  %v92_v36 = vadd.f32 %v91_v34, %v86_v33 }
 0x142   :  { %v87_v35 = vmul.f32 %v85_v29, %v81_v32 }
 0x144   :  { %v93_v37 = vadd.f32 %v91_v34, %v87_v35 }
 0x146   :  { %v94_v38 = vpack.c.bf16 %v93_v37, %v92_v36 }
 0x148   :  { %1697 = vmatmul.mubr.msk.bf16.vlgmr.msra.gmra.mxu1 %vm54_vm0, %v94_v38 }
 0x149   :  { %1702 = vmatprep.mubr.msk.bf16.mxu1 %vm2005_vm1, %v2004_v15 }
 0x208   :  { %v152_v40 = vpop.f32.mrf.mxu1 }
 0x209   :  { %v153_v44 = vadd.f32 %v152_v40, %v102_v41 }
 0x20a   :  { %v1698_v42 = vpop.f32.mrf.mxu1 }
 0x20c   :  { %v155_v43 = vpop.f32.mrf.mxu1 }
 0x20d   :  { %v156_v45 = vadd.f32 %v155_v43, %v102_v41 }
 0x20e   :  { %v1699_v46 = vpop.f32.mrf.mxu1 }
 0x20f   :  { %v2125_v47 = vpack.c.bf16 %v156_v45, %v153_v44 }
 0x211   :  { %283 = vrot.lane.b32.xlu1 %v2125_v47, %s2006_s26  ;;  %161 = vrot.lane.b32.xlu0 %v2125_v47, %s2007_s27 }
 0x215   :  { %281 = vrot.lane.b32.xlu1 %v2125_v47, %s2008_s28 }
 0x283   :  { %v162_v48 = vpop.permute.xlu0 %161  ;;  %v284_v50 = vpop.permute.xlu1 %283 }
 0x284   :  { %v168_v49 = vsel %vm163_vm2, %v162_v48, 0  ;;  %v289_v51 = vsel %vm163_vm2, %v284_v50, 0 }
 0x285   :  { %1701 = vmatpush3.bf16.xpose.msra.mxu1 %v168_v49 }
 0x286   :  { %1712 = vmatprep.subr.bf16.mxu1 %v2004_v15 }
 0x287   :  { %v282_v52 = vpop.permute.xlu1 %281 }
 0x28c   :  { %1703 = vmatmul.mubr.msk.bf16.vlgmr.msra.gmra.mxu1 %vm163_vm2, %v2125_v47 }
 0x28d   :  { %1713 = vmatpush3.bf16.xpose.msra.mxu1 %v289_v51  ;;  %1714 = vmatprep.mubr.msk.bf16.mxu1 %vm2005_vm1, %v2004_v15  ;;  %v1865_v51 = vld [vmem:[%s2466_s4 + $0x8] sm:$0xff]  }
 0x28e   :  { %1724 = vmatprep.subr.bf16.mxu1 %v2004_v15 }
 0x294   :  { %1715 = vmatmul.mubr.msk.bf16.vlgmr.msra.gmra.mxu1 %vm163_vm2, %v282_v52 }
 0x295   :  { %1728 = vmatprep.mubr.msk.bf16.mxu1 %vm2005_vm1, %v2004_v15  ;;  %1725 = vmatpush3.bf16.msra.mxu1 %v1865_v51 }
 0x296   :  { %1726 = vmatprep.subr.bf16.mxu1 %v2004_v15 }
 0x34c   :  { %v204_v54 = vpop.f32.mrf.mxu1 }
 0x34d   :  { %v205_v55 = vadd.f32 %v204_v54, %v2147_v53 }
 0x34e   :  { %v1704_v56 = vpop.f32.mrf.mxu1 }
 0x34f   :  { %v211_v58 = vsel %vm163_vm2, %v205_v55, -inf }
 0x350   :  { %212 = vmax.xlane.f32.xlu1 %v211_v58  ;;  %v207_v59 = vpop.f32.mrf.mxu1 }
 0x351   :  { %v208_v60 = vadd.f32 %v207_v59, %v2153_v57 }
 0x352   :  { %v1705_v61 = vpop.f32.mrf.mxu1 }
 0x353   :  { %v214_v62 = vsel %vm163_vm2, %v208_v60, -inf }
 0x354   :  { %215 = vmax.xlane.f32.xlu0 %v214_v62  ;;  %v325_v63 = vpop.f32.mrf.mxu1 }
 0x355   :  { %v326_v2 = vadd.f32 %v325_v63, %v2147_v53 }
 0x356   :  { %v1716_v3 = vpop.f32.mrf.mxu1 }
 0x357   :  { %v332_v4 = vsel %vm163_vm2, %v326_v2, -inf }
 0x358   :  { %333 = vmax.xlane.f32.xlu0 %v332_v4  ;;  %v328_v5 = vpop.f32.mrf.mxu1 }
 0x359   :  { %v329_v6 = vadd.f32 %v328_v5, %v2153_v57 }
 0x35a   :  { %v1717_v7 = vpop.f32.mrf.mxu1 }
 0x35b   :  { %v335_v8 = vsel %vm163_vm2, %v329_v6, -inf }
 0x35c   :  { %336 = vmax.xlane.f32.xlu0 %v335_v8  ;;  %v477_v8 = vsub.s32 4, %v2103_v24 }
 0x3d9   :  { %v213_v9 = vpop.xlane.xlu1 %212 }
 0x3da   :  { %v217_v10 = vsub.f32 %v205_v55, %v213_v9  ;;  %v1866_v55 = vld [vmem:[%s2466_s4] sm:$0xff]   ;;  %v478_v9 = vrot.slane %v2109_v26, %v477_v8 }
 0x3db   :  { %1727 = vmatpush3.bf16.msra.mxu1 %v1866_v55 }
 0x3dc   :  { %v219_v11 = vmul.f32 1.442695, %v217_v10  ;;  %1740 = vmatprep.subr.bf16.mxu1 %v2004_v15 }
 0x3dd   :  { %v216_v12 = vpop.xlane.xlu0 %215 }
 0x3de   :  { %1897 = vpow2.f32 %v219_v11  ;;  %v218_v13 = vsub.f32 %v208_v60, %v216_v12 }
 0x3e0   :  { %v221_v14 = vmul.f32 1.442695, %v218_v13 }
 0x3e1   :  { %v334_v16 = vpop.xlane.xlu0 %333 }
 0x3e2   :  { %1899 = vpow2.f32 %v221_v14  ;;  %v338_v17 = vsub.f32 %v326_v2, %v334_v16 }
 0x3e4   :  { %v340_v18 = vmul.f32 1.442695, %v338_v17 }
 0x3e5   :  { %v337_v19 = vpop.xlane.xlu0 %336 }
 0x3e6   :  { %1901 = vpow2.f32 %v340_v18  ;;  %v339_v20 = vsub.f32 %v329_v6, %v337_v19 }
 0x3e8   :  { %v342_v21 = vmul.f32 1.442695, %v339_v20 }
 0x3ea   :  { %1903 = vpow2.f32 %v342_v21 }
 0x3eb   :  { %v1898_v22 = vpop.eup %1897 }
 0x3ec   :  { %v223_v23 = vsel %vm163_vm2, %v1898_v22, 0.0 }
 0x3ed   :  { %224 = vadd.xlane.f32.xlu1 %v223_v23 }
 0x3ef   :  { %v1900_v27 = vpop.eup %1899 }
 0x3f0   :  { %v226_v28 = vsel %vm163_vm2, %v1900_v27, 0.0 }
 0x3f1   :  { %227 = vadd.xlane.f32.xlu0 %v226_v28 }
 0x3f3   :  { %v1902_v29 = vpop.eup %1901 }
 0x3f4   :  { %v344_v31 = vsel %vm163_vm2, %v1902_v29, 0.0 }
 0x3f5   :  { %345 = vadd.xlane.f32.xlu1 %v344_v31 }
 0x3f7   :  { %v1904_v32 = vpop.eup %1903 }
 0x3f8   :  { %v347_v33 = vsel %vm163_vm2, %v1904_v32, 0.0 }
 0x3f9   :  { %348 = vadd.xlane.f32.xlu0 %v347_v33  ;;  %v1867_v33 = vld [vmem:[%s2467_s5 + $0x8] sm:$0xff]  }
 0x406   :  { %234 = vrot.lane.b32.xlu1 %v2125_v47, %s2009_s2 }
 0x40f   :  { %355 = vrot.lane.b32.xlu0 %v2125_v47, %s2010_s13 }
 0x476   :  { %v225_v34 = vpop.xlane.xlu1 %224 }
 0x477   :  { %1905 = vrcp.f32 %v225_v34  ;;  %v1868_v34 = vld [vmem:[%s2467_s5] sm:$0xff]  }
 0x47a   :  { %v228_v35 = vpop.xlane.xlu0 %227 }
 0x47b   :  { %1907 = vrcp.f32 %v228_v35 }
 0x47e   :  { %v346_v36 = vpop.xlane.xlu1 %345 }
 0x47f   :  { %1909 = vrcp.f32 %v346_v36 }
 0x482   :  { %v235_v37 = vpop.permute.xlu1 %234  ;;  %v349_v38 = vpop.xlane.xlu0 %348 }
 0x483   :  { %1911 = vrcp.f32 %v349_v38  ;;  %1707 = vmatpush3.bf16.msra.mxu0 %v235_v37 }
 0x484   :  { %1718 = vmatprep.subr.bf16.mxu0 %v2004_v15  ;;  %v1906_v40 = vpop.eup %1905 }
 0x485   :  { %v231_v42 = vmul.f32 %v1906_v40, %v1898_v22 }
 0x486   :  { %v356_v45 = vpop.permute.xlu0 %355 }
 0x488   :  { %v1908_v41 = vpop.eup %1907 }
 0x489   :  { %v232_v43 = vmul.f32 %v1908_v41, %v1900_v27 }
 0x48b   :  { %v233_v44 = vpack.c.bf16 %v232_v43, %v231_v42  ;;  %v509_v42 = vsub.s32 2, %v2103_v24 }
 0x48c   :  { %v1910_v46 = vpop.eup %1909 }
 0x48d   :  { %1709 = vmatmul.mubr.msk.bf16.vlgmr.msra.gmra.mxu0 %vm163_vm2, %v233_v44  ;;  %v352_v48 = vmul.f32 %v1910_v46, %v1902_v29  ;;  %v515_v46 = vsub.s32 3, %v2103_v24 }
 0x48e   :  { %1719 = vmatpush3.bf16.msra.mxu0 %v356_v45  ;;  %1720 = vmatprep.mubr.msk.bf16.mxu0 %vm2005_vm1, %v2004_v15  ;;  %v510_v45 = vrot.slane %v2109_v26, %v509_v42 }
 0x48f   :  { %1732 = vmatprep.subr.bf16.mxu0 %v2004_v15 }
 0x490   :  { %v1912_v47 = vpop.eup %1911 }
 0x491   :  { %v353_v49 = vmul.f32 %v1912_v47, %v1904_v32 }
 0x493   :  { %v354_v50 = vpack.c.bf16 %v353_v49, %v352_v48 }
 0x495   :  { %1721 = vmatmul.mubr.msk.bf16.vlgmr.msra.gmra.mxu0 %vm163_vm2, %v354_v50  ;;  %v516_v50 = vrot.slane %v2109_v26, %v515_v46 }
 0x496   :  { %1736 = vmatprep.mubr.msk.bf16.mxu0 %vm2005_vm1, %v2004_v15  ;;  %1733 = vmatpush3.bf16.msra.mxu0 %v1867_v33 }
 0x497   :  { %1734 = vmatprep.subr.bf16.mxu0 %v2004_v15 }
 0x49a   :  { %1735 = vmatpush3.bf16.msra.mxu0 %v1868_v34 }
 0x49b   :  { %1760 = vmatprep.subr.bf16.mxu0 %v2004_v15 }
 0x54d   :  { %v274_v52 = vpop.f32.mrf.mxu0 }
 0x54f   :  { %v1710_v54 = vpop.f32.mrf.mxu0 }
 0x551   :  { %v277_v56 = vpop.f32.mrf.mxu0 }
 0x553   :  { %v1711_v58 = vpop.f32.mrf.mxu0 }
 0x554   :  { %v1870_v58 = vld [vmem:[%s2468_s6 + $0x30] sm:$0xff]  }
 0x555   :  { %v395_v59 = vpop.f32.mrf.mxu0 }
 0x557   :  { %v1722_v60 = vpop.f32.mrf.mxu0 }
 0x558   :  { %v1872_v60 = vld [vmem:[%s2468_s6 + $0x20] sm:$0xff]  }
 0x559   :  { %v398_v61 = vpop.f32.mrf.mxu0 }
 0x55a   :  { %v1853_v62 = vpack.i.bf16 %v398_v61, %v395_v59  ;;  %v1871_v59 = vld [vmem:[%s2468_s6 + $0x28] sm:$0xff]   ;;  %v1873_v61 = vld [vmem:[%s2468_s6 + $0x18] sm:$0xff]  }
 0x55b   :  { %v1723_v63 = vpop.f32.mrf.mxu0 }
 0x55c   :  { %1854 = vrot.lane.b32.xlu1 %v1853_v62, %s2011_s18  ;;  %v1874_v62 = vld [vmem:[%s2468_s6 + $0x10] sm:$0xff]   ;;  %v1875_v63 = vld [vmem:[%s2468_s6 + $0x8] sm:$0xff]  }
 0x5ce   :  { %v1855_v2 = vpop.permute.xlu1 %1854 }
 0x5cf   :  { %v1857_v3 = vunpack.i.h.bf16 %v1855_v2  ;;  %v1856_v4 = vunpack.i.l.bf16 %v1855_v2  ;;  %v1876_v2 = vld [vmem:[%s2468_s6] sm:$0xff]  }
 0x5d1   :  { %v411_v5 = vsel %vm163_vm2, %v277_v56, %v1857_v3  ;;  %v410_v6 = vsel %vm163_vm2, %v274_v52, %v1856_v4  ;;  %v1869_v56 = vld [vmem:[%s2468_s6 + $0x38] sm:$0xff]   ;;  %v526_v3 = vsub.s32 7, %v2103_v24 }
 0x5d2   :  { %v412_v7 = vpack.c.bf16 %v411_v5, %v410_v6 }
 0x5d3   :  { %v527_v4 = vrot.slane %v2109_v26, %v526_v3 }
 0x5d4   :  { %1729 = vmatmul.mubr.msk.bf16.vlgmr.msra.gmra.mxu1 %vm54_vm0, %v412_v7 }
 0x5d5   :  { %1756 = vmatprep.mubr.msk.bf16.mxu1 %vm2005_vm1, %v2004_v15  ;;  %1741 = vmatpush3.bf16.msra.mxu1 %v1869_v56 }
 0x5d6   :  { %1742 = vmatprep.subr.bf16.mxu1 %v2004_v15 }
 0x5d9   :  { %1743 = vmatpush3.bf16.msra.mxu1 %v1870_v58 }
 0x5da   :  { %1744 = vmatprep.subr.bf16.mxu1 %v2004_v15 }
 0x5dd   :  { %1745 = vmatpush3.bf16.msra.mxu1 %v1871_v59 }
 0x5de   :  { %1746 = vmatprep.subr.bf16.mxu1 %v2004_v15 }
 0x5e1   :  { %1747 = vmatpush3.bf16.msra.mxu1 %v1872_v60 }
 0x5e2   :  { %1748 = vmatprep.subr.bf16.mxu1 %v2004_v15 }
 0x5e5   :  { %1749 = vmatpush3.bf16.msra.mxu1 %v1873_v61 }
 0x5e6   :  { %1750 = vmatprep.subr.bf16.mxu1 %v2004_v15 }
 0x5e9   :  { %1751 = vmatpush3.bf16.msra.mxu1 %v1874_v62  ;;  %v2296_v62 = vld [vmem:[%s2469_s7 + $0x8] sm:$0xff] }
 0x5ea   :  { %1752 = vmatprep.subr.bf16.mxu1 %v2004_v15 }
 0x5ed   :  { %1753 = vmatpush3.bf16.msra.mxu1 %v1875_v63  ;;  %v745_v63 = vrot.slane %v2296_v62, %v84_v25  ;;  %v763_v25 = vrot.slane %v2296_v62, %v101_v39 }
 0x5ee   :  { %1754 = vmatprep.subr.bf16.mxu1 %v2004_v15 }
 0x5f1   :  { %1755 = vmatpush3.bf16.msra.mxu1 %v1876_v2 }
 0x5f2   :  { %1786 = vmatprep.subr.bf16.mxu1 %v2004_v15 }
 0x694   :  { %v466_v10 = vpop.f32.mrf.mxu1 }
 0x695   :  { %v473_v11 = vadd.f32 %v466_v10, %v2074_v0 }
 0x696   :  { %v1730_v12 = vpop.f32.mrf.mxu1 }
 0x697   :  { %v2197_v13 = vadd.f32 %v478_v9, %v473_v11 }
 0x698   :  { %v469_v14 = vpop.f32.mrf.mxu1 }
 0x699   :  { %v474_v16 = vadd.f32 %v469_v14, %v2079_v1  ;;  %v481_v17 = vsel %vm54_vm0, %v2197_v13, 0.0 }
 0x69a   :  { %482 = vadd.xlane.f32.xlu1 %v481_v17  ;;  %v1731_v18 = vpop.f32.mrf.mxu1 }
 0x69b   :  { %v2202_v19 = vadd.f32 %v478_v9, %v474_v16 }
 0x69d   :  { %v484_v20 = vsel %vm54_vm0, %v2202_v19, 0.0 }
 0x69e   :  { %485 = vadd.xlane.f32.xlu0 %v484_v20 }
 0x723   :  { %v483_v21 = vpop.xlane.xlu1 %482 }
 0x724   :  { %v487_v22 = vmul.f32 0.03125, %v483_v21 }
 0x726   :  { %v489_v0 = vsub.f32 %v2197_v13, %v487_v22 }
 0x727   :  { %v486_v23 = vpop.xlane.xlu0 %485 }
 0x728   :  { %v488_v27 = vmul.f32 0.03125, %v486_v23  ;;  %v491_v28 = vmul.f32 %v489_v0, %v489_v0 }
 0x72a   :  { %v490_v1 = vsub.f32 %v2202_v19, %v488_v27  ;;  %v493_v29 = vsel %vm54_vm0, %v491_v28, 0.0 }
 0x72b   :  { %494 = vadd.xlane.f32.xlu0 %v493_v29  ;;  %v710_v29 = vsub.s32 5, %v2103_v24 }
 0x72c   :  { %v492_v31 = vmul.f32 %v490_v1, %v490_v1 }
 0x72e   :  { %v496_v32 = vsel %vm54_vm0, %v492_v31, 0.0  ;;  %v711_v31 = vrot.slane %v2109_v26, %v710_v29 }
 0x72f   :  { %497 = vadd.xlane.f32.xlu1 %v496_v32 }
 0x7b4   :  { %v495_v35 = vpop.xlane.xlu0 %494 }
 0x7b5   :  { %v499_v36 = vmul.f32 0.03125, %v495_v35 }
 0x7b7   :  { %v501_v37 = vadd.f32 1e-05, %v499_v36 }
 0x7b8   :  { %v498_v38 = vpop.xlane.xlu1 %497 }
 0x7b9   :  { %1913 = vrsqrt.f32 %v501_v37  ;;  %v500_v40 = vmul.f32 0.03125, %v498_v38 }
 0x7bb   :  { %v502_v41 = vadd.f32 1e-05, %v500_v40 }
 0x7bd   :  { %1915 = vrsqrt.f32 %v502_v41 }
 0x7c6   :  { %v1914_v43 = vpop.eup %1913 }
 0x7c7   :  { %v505_v44 = vmul.f32 %v1914_v43, %v489_v0 }
 0x7c9   :  { %v511_v49 = vmul.f32 %v510_v45, %v505_v44 }
 0x7ca   :  { %v1916_v47 = vpop.eup %1915 }
 0x7cb   :  { %v506_v48 = vmul.f32 %v1916_v47, %v490_v1  ;;  %v517_v52 = vadd.f32 %v516_v50, %v511_v49 }
 0x7cd   :  { %v512_v51 = vmul.f32 %v510_v45, %v506_v48 }
 0x7cf   :  { %v518_v54 = vadd.f32 %v516_v50, %v512_v51 }
 0x7d1   :  { %v519_v55 = vpack.c.bf16 %v518_v54, %v517_v52  ;;  %v1877_v52 = vld [vmem:[%s2465_s3 + $0x18] sm:$0xff]   ;;  %v1878_v54 = vld [vmem:[%s2465_s3 + $0x10] sm:$0xff]  }
 0x7d3   :  { %1737 = vmatmul.mubr.msk.bf16.vlgmr.msra.gmra.mxu0 %vm54_vm0, %v519_v55 }
 0x7d4   :  { %1764 = vmatprep.mubr.msk.bf16.mxu0 %vm2005_vm1, %v2004_v15  ;;  %1761 = vmatpush3.bf16.msra.mxu0 %v1877_v52 }
 0x7d5   :  { %1762 = vmatprep.subr.bf16.mxu0 %v2004_v15 }
 0x7d8   :  { %1763 = vmatpush3.bf16.msra.mxu0 %v1878_v54 }
 0x7d9   :  { %1768 = vmatprep.subr.bf16.mxu0 %v2004_v15 }
 0x893   :  { %v577_v5 = vpop.f32.mrf.mxu0 }
 0x894   :  { %v578_v6 = vadd.f32 %v577_v5, %v527_v4 }
 0x895   :  { %v1738_v7 = vpop.f32.mrf.mxu0 }
 0x896   :  { %v1566_v9 = vmul.f32 -1.702, %v578_v6 }
 0x897   :  { %v580_v10 = vpop.f32.mrf.mxu0 }
 0x898   :  { %v588_v11 = vmul.f32 1.442695, %v1566_v9  ;;  %v581_v12 = vadd.f32 %v580_v10, %v527_v4  ;;  %v751_v4 = vrot.slane %v2296_v62, %v90_v30 }
 0x899   :  { %v1739_v14 = vpop.f32.mrf.mxu0 }
 0x89a   :  { %1917 = vpow2.f32 %v588_v11  ;;  %v1567_v16 = vmul.f32 -1.702, %v581_v12 }
 0x89c   :  { %v590_v17 = vmul.f32 1.442695, %v1567_v16 }
 0x89e   :  { %1919 = vpow2.f32 %v590_v17 }
 0x8a7   :  { %v1918_v18 = vpop.eup %1917 }
 0x8a8   :  { %v592_v20 = vadd.f32 1.0, %v1918_v18 }
 0x8aa   :  { %1921 = vrcp.f32 %v592_v20 }
 0x8ab   :  { %v1920_v21 = vpop.eup %1919 }
 0x8ac   :  { %v593_v22 = vadd.f32 1.0, %v1920_v21 }
 0x8ae   :  { %1923 = vrcp.f32 %v593_v22 }
 0x8b7   :  { %v1922_v0 = vpop.eup %1921 }
 0x8b8   :  { %v598_v27 = vmul.f32 %v1922_v0, %v578_v6 }
 0x8bb   :  { %v1924_v23 = vpop.eup %1923 }
 0x8bc   :  { %v599_v28 = vmul.f32 %v1924_v23, %v581_v12 }
 0x8be   :  { %v600_v1 = vpack.c.bf16 %v599_v28, %v598_v27 }
 0x8c0   :  { %1757 = vmatmul.mubr.bf16.vlgmr.msra.gmra.mxu1 %v600_v1 }
 0x8c1   :  { %1788 = vmatprep.mubr.msk.bf16.mxu1 %vm2005_vm1, %v2004_v15 }
 0x980   :  { %v699_v32 = vpop.f32.mrf.mxu1 }
 0x981   :  { %v706_v33 = vadd.f32 %v699_v32, %v2197_v13 }
 0x982   :  { %v1758_v34 = vpop.f32.mrf.mxu1 }
 0x983   :  { %v2272_v35 = vadd.f32 %v711_v31, %v706_v33 }
 0x984   :  { %v702_v36 = vpop.f32.mrf.mxu1 }
 0x985   :  { %v707_v37 = vadd.f32 %v702_v36, %v2202_v19  ;;  %v716_v38 = vsel %vm54_vm0, %v2272_v35, 0.0 }
 0x986   :  { %717 = vadd.xlane.f32.xlu0 %v716_v38  ;;  %v1759_v40 = vpop.f32.mrf.mxu1 }
 0x987   :  { %v2277_v41 = vadd.f32 %v711_v31, %v707_v37 }
 0x989   :  { %v719_v43 = vsel %vm54_vm0, %v2277_v41, 0.0 }
 0x98a   :  { %720 = vadd.xlane.f32.xlu1 %v719_v43 }
 0xa0f   :  { %v718_v26 = vpop.xlane.xlu0 %717 }
 0xa10   :  { %v722_v44 = vmul.f32 0.03125, %v718_v26 }
 0xa12   :  { %v724_v13 = vsub.f32 %v2272_v35, %v722_v44 }
 0xa13   :  { %v721_v45 = vpop.xlane.xlu1 %720 }
 0xa14   :  { %v723_v47 = vmul.f32 0.03125, %v721_v45  ;;  %v726_v48 = vmul.f32 %v724_v13, %v724_v13 }
 0xa16   :  { %v725_v19 = vsub.f32 %v2277_v41, %v723_v47  ;;  %v728_v49 = vsel %vm54_vm0, %v726_v48, 0.0 }
 0xa17   :  { %729 = vadd.xlane.f32.xlu0 %v728_v49 }
 0xa18   :  { %v727_v50 = vmul.f32 %v725_v19, %v725_v19 }
 0xa1a   :  { %v731_v51 = vsel %vm54_vm0, %v727_v50, 0.0 }
 0xa1b   :  { %732 = vadd.xlane.f32.xlu1 %v731_v51 }
 0xaa0   :  { %v730_v55 = vpop.xlane.xlu0 %729 }
 0xaa1   :  { %v734_v56 = vmul.f32 0.03125, %v730_v55 }
 0xaa3   :  { %v736_v58 = vadd.f32 1e-05, %v734_v56 }
 0xaa4   :  { %v733_v59 = vpop.xlane.xlu1 %732 }
 0xaa5   :  { %1925 = vrsqrt.f32 %v736_v58  ;;  %v735_v60 = vmul.f32 0.03125, %v733_v59 }
 0xaa7   :  { %v737_v61 = vadd.f32 1e-05, %v735_v60 }
 0xaa9   :  { %1927 = vrsqrt.f32 %v737_v61 }
 0xab2   :  { %v1926_v2 = vpop.eup %1925 }
 0xab3   :  { %v740_v5 = vmul.f32 %v1926_v2, %v724_v13 }
 0xab5   :  { %v746_v6 = vmul.f32 %v745_v63, %v740_v5 }
 0xab6   :  { %v1928_v7 = vpop.eup %1927 }
 0xab7   :  { %v741_v9 = vmul.f32 %v1928_v7, %v725_v19  ;;  %v752_v10 = vadd.f32 %v751_v4, %v746_v6 }
 0xab9   :  { %v747_v11 = vmul.f32 %v745_v63, %v741_v9 }
 0xabb   :  { %v753_v12 = vadd.f32 %v751_v4, %v747_v11 }
 0xabd   :  { %v754_v14 = vpack.c.bf16 %v753_v12, %v752_v10 }
 0xabf   :  { %1765 = vmatmul.mubr.msk.bf16.vlgmr.msra.gmra.mxu0 %vm54_vm0, %v754_v14 }
 0xac0   :  { %1770 = vmatprep.mubr.msk.bf16.mxu0 %vm2005_vm1, %v2004_v15 }
 0xb7f   :  { %v813_v16 = vpop.f32.mrf.mxu0 }
 0xb80   :  { %v814_v18 = vadd.f32 %v813_v16, %v763_v25 }
 0xb81   :  { %v1766_v17 = vpop.f32.mrf.mxu0 }
 0xb83   :  { %v816_v30 = vpop.f32.mrf.mxu0 }
 0xb84   :  { %v817_v20 = vadd.f32 %v816_v30, %v763_v25 }
 0xb85   :  { %v1767_v21 = vpop.f32.mrf.mxu0 }
 0xb86   :  { %v2310_v22 = vpack.c.bf16 %v817_v20, %v814_v18 }
 0xb88   :  { %822 = vrot.lane.b32.xlu0 %v2310_v22, %s2007_s27 }
 0xb8c   :  { %943 = vrot.lane.b32.xlu0 %v2310_v22, %s2006_s26 }
 0xb90   :  { %941 = vrot.lane.b32.xlu0 %v2310_v22, %s2008_s28 }
 0xbfa   :  { %v823_v0 = vpop.permute.xlu0 %822 }
 0xbfb   :  { %v828_v23 = vsel %vm163_vm2, %v823_v0, 0 }
 0xbfc   :  { %1769 = vmatpush3.bf16.xpose.msra.mxu0 %v828_v23 }
 0xbfd   :  { %1774 = vmatprep.subr.bf16.mxu0 %v2004_v15 }
 0xbfe   :  { %v944_v55 = vpop.permute.xlu0 %943 }
 0xbff   :  { %v949_v58 = vsel %vm163_vm2, %v944_v55, 0 }
 0xc02   :  { %v942_v59 = vpop.permute.xlu0 %941 }
 0xc03   :  { %1771 = vmatmul.mubr.msk.bf16.vlgmr.msra.gmra.mxu0 %vm163_vm2, %v2310_v22 }
 0xc04   :  { %1776 = vmatprep.mubr.msk.bf16.mxu0 %vm2005_vm1, %v2004_v15 }
 0xcc3   :  { %v864_v39 = vpop.f32.mrf.mxu0 }
 0xcc4   :  { %v865_v27 = vadd.f32 %v864_v39, %v2147_v53 }
 0xcc5   :  { %v1772_v28 = vpop.f32.mrf.mxu0 }
 0xcc6   :  { %v871_v1 = vsel %vm163_vm2, %v865_v27, -inf }
 0xcc7   :  { %872 = vmax.xlane.f32.xlu1 %v871_v1  ;;  %v867_v31 = vpop.f32.mrf.mxu0 }
 0xcc8   :  { %v868_v32 = vadd.f32 %v867_v31, %v2153_v57 }
 0xcc9   :  { %v1773_v33 = vpop.f32.mrf.mxu0 }
 0xcca   :  { %v874_v34 = vsel %vm163_vm2, %v868_v32, -inf  ;;  %v1880_v33 = vld [vmem:[%s2466_s4 + $0x10] sm:$0xff]  }
 0xccb   :  { %875 = vmax.xlane.f32.xlu1 %v874_v34 }
 0xd50   :  { %v873_v36 = vpop.xlane.xlu1 %872 }
 0xd51   :  { %v877_v37 = vsub.f32 %v865_v27, %v873_v36 }
 0xd53   :  { %v879_v38 = vmul.f32 1.442695, %v877_v37 }
 0xd54   :  { %v876_v40 = vpop.xlane.xlu1 %875 }
 0xd55   :  { %1929 = vpow2.f32 %v879_v38  ;;  %v878_v43 = vsub.f32 %v868_v32, %v876_v40 }
 0xd57   :  { %v881_v26 = vmul.f32 1.442695, %v878_v43 }
 0xd59   :  { %1931 = vpow2.f32 %v881_v26 }
 0xd62   :  { %v1930_v44 = vpop.eup %1929 }
 0xd63   :  { %v883_v13 = vsel %vm163_vm2, %v1930_v44, 0.0 }
 0xd64   :  { %884 = vadd.xlane.f32.xlu1 %v883_v13 }
 0xd66   :  { %v1932_v45 = vpop.eup %1931 }
 0xd67   :  { %v886_v47 = vsel %vm163_vm2, %v1932_v45, 0.0 }
 0xd68   :  { %887 = vadd.xlane.f32.xlu1 %v886_v47 }
 0xd79   :  { %894 = vrot.lane.b32.xlu1 %v2310_v22, %s2009_s2 }
 0xded   :  { %v885_v48 = vpop.xlane.xlu1 %884 }
 0xdee   :  { %1933 = vrcp.f32 %v885_v48  ;;  %v1139_v48 = vrot.slane %v2296_v62, %v477_v8 }
 0xdf1   :  { %v888_v19 = vpop.xlane.xlu1 %887 }
 0xdf2   :  { %1935 = vrcp.f32 %v888_v19 }
 0xdf5   :  { %v895_v49 = vpop.permute.xlu1 %894 }
 0xdf6   :  { %1775 = vmatpush3.bf16.msra.mxu0 %v895_v49 }
 0xdf7   :  { %1780 = vmatprep.subr.bf16.mxu0 %v2004_v15 }
 0xdfb   :  { %v1934_v50 = vpop.eup %1933 }
 0xdfc   :  { %v891_v52 = vmul.f32 %v1934_v50, %v1930_v44 }
 0xdff   :  { %v1936_v51 = vpop.eup %1935 }
 0xe00   :  { %v892_v54 = vmul.f32 %v1936_v51, %v1932_v45 }
 0xe02   :  { %v893_v56 = vpack.c.bf16 %v892_v54, %v891_v52 }
 0xe04   :  { %1777 = vmatmul.mubr.msk.bf16.vlgmr.msra.gmra.mxu0 %vm163_vm2, %v893_v56 }
 0xe05   :  { %1781 = vmatpush3.bf16.xpose.msra.mxu0 %v949_v58  ;;  %1782 = vmatprep.mubr.msk.bf16.mxu0 %vm2005_vm1, %v2004_v15 }
 0xe06   :  { %1792 = vmatprep.subr.bf16.mxu0 %v2004_v15 }
 0xe0c   :  { %1783 = vmatmul.mubr.msk.bf16.vlgmr.msra.gmra.mxu0 %vm163_vm2, %v942_v59 }
 0xe0d   :  { %1796 = vmatprep.mubr.msk.bf16.mxu0 %vm2005_vm1, %v2004_v15 }
 0xec4   :  { %v934_v60 = vpop.f32.mrf.mxu0 }
 0xec6   :  { %v1778_v61 = vpop.f32.mrf.mxu0 }
 0xec8   :  { %v937_v63 = vpop.f32.mrf.mxu0 }
 0xeca   :  { %v1779_v2 = vpop.f32.mrf.mxu0 }
 0xecc   :  { %v985_v4 = vpop.f32.mrf.mxu0 }
 0xecd   :  { %v986_v5 = vadd.f32 %v985_v4, %v2147_v53 }
 0xece   :  { %v1784_v6 = vpop.f32.mrf.mxu0 }
 0xecf   :  { %v992_v7 = vsel %vm163_vm2, %v986_v5, -inf }
 0xed0   :  { %993 = vmax.xlane.f32.xlu0 %v992_v7  ;;  %v988_v9 = vpop.f32.mrf.mxu0  ;;  %v1881_v7 = vld [vmem:[%s2467_s5 + $0x18] sm:$0xff]  }
 0xed1   :  { %v989_v10 = vadd.f32 %v988_v9, %v2153_v57  ;;  %v1882_v9 = vld [vmem:[%s2467_s5 + $0x10] sm:$0xff]  }
 0xed2   :  { %v1785_v11 = vpop.f32.mrf.mxu0 }
 0xed3   :  { %v995_v12 = vsel %vm163_vm2, %v989_v10, -inf }
 0xed4   :  { %996 = vmax.xlane.f32.xlu1 %v995_v12 }
 0xf59   :  { %v994_v14 = vpop.xlane.xlu0 %993 }
 0xf5a   :  { %v998_v16 = vsub.f32 %v986_v5, %v994_v14 }
 0xf5c   :  { %v1000_v25 = vmul.f32 1.442695, %v998_v16 }
 0xf5d   :  { %v997_v17 = vpop.xlane.xlu1 %996 }
 0xf5e   :  { %1937 = vpow2.f32 %v1000_v25  ;;  %v999_v30 = vsub.f32 %v989_v10, %v997_v17 }
 0xf60   :  { %v1002_v18 = vmul.f32 1.442695, %v999_v30 }
 0xf62   :  { %1939 = vpow2.f32 %v1002_v18  ;;  %v1171_v18 = vrot.slane %v2296_v62, %v509_v42  ;;  %v1883_v42 = vld [vmem:[%s2468_s6 + $0x78] sm:$0xff]  }
 0xf6b   :  { %v1938_v53 = vpop.eup %1937 }
 0xf6c   :  { %v1004_v20 = vsel %vm163_vm2, %v1938_v53, 0.0 }
 0xf6d   :  { %1005 = vadd.xlane.f32.xlu0 %v1004_v20 }
 0xf6f   :  { %v1940_v21 = vpop.eup %1939 }
 0xf70   :  { %v1007_v0 = vsel %vm163_vm2, %v1940_v21, 0.0 }
 0xf71   :  { %1008 = vadd.xlane.f32.xlu0 %v1007_v0  ;;  %v1177_v0 = vrot.slane %v2296_v62, %v515_v46  ;;  %v1884_v46 = vld [vmem:[%s2468_s6 + $0x70] sm:$0xff]  }
 0xf87   :  { %1015 = vrot.lane.b32.xlu0 %v2310_v22, %s2010_s13  ;;  %v1879_v22 = vld [vmem:[%s2466_s4 + $0x18] sm:$0xff]  }
 0xf88   :  { %1793 = vmatpush3.bf16.msra.mxu0 %v1879_v22  ;;  %v1889_v22 = vld [vmem:[%s2468_s6 + $0x48] sm:$0xff]  }
 0xf89   :  { %1794 = vmatprep.subr.bf16.mxu0 %v2004_v15 }
 0xf8c   :  { %1795 = vmatpush3.bf16.msra.mxu0 %v1880_v33  ;;  %v1890_v33 = vld [vmem:[%s2468_s6 + $0x40] sm:$0xff]  }
 0xf8d   :  { %1808 = vmatprep.subr.bf16.mxu0 %v2004_v15 }
 0xff6   :  { %v1006_v57 = vpop.xlane.xlu0 %1005 }
 0xff7   :  { %1941 = vrcp.f32 %v1006_v57 }
 0xffa   :  { %v1009_v23 = vpop.xlane.xlu0 %1008 }
 0xffb   :  { %1943 = vrcp.f32 %v1009_v23 }
 0xffe   :  { %v1016_v39 = vpop.permute.xlu0 %1015 }
 0xfff   :  { %1787 = vmatpush3.bf16.msra.mxu1 %v1016_v39 }
0x1000   :  { %1800 = vmatprep.subr.bf16.mxu1 %v2004_v15 }
0x1004   :  { %v1942_v27 = vpop.eup %1941 }
0x1005   :  { %v1012_v1 = vmul.f32 %v1942_v27, %v1938_v53 }
0x1008   :  { %v1944_v28 = vpop.eup %1943 }
0x1009   :  { %v1013_v31 = vmul.f32 %v1944_v28, %v1940_v21  ;;  %v1885_v28 = vld [vmem:[%s2468_s6 + $0x68] sm:$0xff]  }
0x100b   :  { %v1014_v32 = vpack.c.bf16 %v1013_v31, %v1012_v1  ;;  %v1886_v1 = vld [vmem:[%s2468_s6 + $0x60] sm:$0xff]   ;;  %v1887_v31 = vld [vmem:[%s2468_s6 + $0x58] sm:$0xff]  }
0x100d   :  { %1789 = vmatmul.mubr.msk.bf16.vlgmr.msra.gmra.mxu1 %vm163_vm2, %v1014_v32  ;;  %v1888_v32 = vld [vmem:[%s2468_s6 + $0x50] sm:$0xff]  }
0x100e   :  { %1804 = vmatprep.mubr.msk.bf16.mxu1 %vm2005_vm1, %v2004_v15  ;;  %1801 = vmatpush3.bf16.msra.mxu1 %v1881_v7 }
0x100f   :  { %1802 = vmatprep.subr.bf16.mxu1 %v2004_v15 }
0x1012   :  { %1803 = vmatpush3.bf16.msra.mxu1 %v1882_v9 }
0x1013   :  { %1828 = vmatprep.subr.mxu1 %v2004_v15 }
0x10cd   :  { %v1055_v34 = vpop.f32.mrf.mxu1 }
0x10cf   :  { %v1790_v36 = vpop.f32.mrf.mxu1 }
0x10d1   :  { %v1058_v37 = vpop.f32.mrf.mxu1 }
0x10d2   :  { %v1858_v38 = vpack.i.bf16 %v1058_v37, %v1055_v34  ;;  %v1189_v34 = vrot.slane %v2296_v62, %v526_v3 }
0x10d3   :  { %v1791_v40 = vpop.f32.mrf.mxu1 }
0x10d4   :  { %1859 = vrot.lane.b32.xlu1 %v1858_v38, %s2011_s18 }
0x1146   :  { %v1860_v43 = vpop.permute.xlu1 %1859 }
0x1147   :  { %v1862_v26 = vunpack.i.h.bf16 %v1860_v43  ;;  %v1861_v44 = vunpack.i.l.bf16 %v1860_v43 }
0x1149   :  { %v1071_v13 = vsel %vm163_vm2, %v937_v63, %v1862_v26  ;;  %v1070_v45 = vsel %vm163_vm2, %v934_v60, %v1861_v44 }
0x114a   :  { %v1072_v47 = vpack.c.bf16 %v1071_v13, %v1070_v45 }
0x114c   :  { %1797 = vmatmul.mubr.msk.bf16.vlgmr.msra.gmra.mxu0 %vm54_vm0, %v1072_v47 }
0x114d   :  { %1824 = vmatprep.mubr.msk.bf16.mxu0 %vm2005_vm1, %v2004_v15  ;;  %1809 = vmatpush3.bf16.msra.mxu0 %v1883_v42 }
0x114e   :  { %1810 = vmatprep.subr.bf16.mxu0 %v2004_v15 }
0x1151   :  { %1811 = vmatpush3.bf16.msra.mxu0 %v1884_v46 }
0x1152   :  { %1812 = vmatprep.subr.bf16.mxu0 %v2004_v15 }
0x1155   :  { %1813 = vmatpush3.bf16.msra.mxu0 %v1885_v28 }
0x1156   :  { %1814 = vmatprep.subr.bf16.mxu0 %v2004_v15 }
0x1159   :  { %1815 = vmatpush3.bf16.msra.mxu0 %v1886_v1 }
0x115a   :  { %1816 = vmatprep.subr.bf16.mxu0 %v2004_v15 }
0x115d   :  { %1817 = vmatpush3.bf16.msra.mxu0 %v1887_v31 }
0x115e   :  { %1818 = vmatprep.subr.bf16.mxu0 %v2004_v15 }
0x1161   :  { %1819 = vmatpush3.bf16.msra.mxu0 %v1888_v32 }
0x1162   :  { %1820 = vmatprep.subr.bf16.mxu0 %v2004_v15 }
0x1165   :  { %1821 = vmatpush3.bf16.msra.mxu0 %v1889_v22 }
0x1166   :  { %1822 = vmatprep.subr.bf16.mxu0 %v2004_v15 }
0x1169   :  { %1823 = vmatpush3.bf16.msra.mxu0 %v1890_v33 }
0x120c   :  { %v1127_v19 = vpop.f32.mrf.mxu0 }
0x120d   :  { %v1134_v49 = vadd.f32 %v1127_v19, %v2272_v35 }
0x120e   :  { %v1798_v50 = vpop.f32.mrf.mxu0 }
0x120f   :  { %v2371_v51 = vadd.f32 %v1139_v48, %v1134_v49 }
0x1210   :  { %v1130_v52 = vpop.f32.mrf.mxu0 }
0x1211   :  { %v1135_v54 = vadd.f32 %v1130_v52, %v2277_v41  ;;  %v1142_v55 = vsel %vm54_vm0, %v2371_v51, 0.0 }
0x1212   :  { %1143 = vadd.xlane.f32.xlu1 %v1142_v55  ;;  %v1799_v56 = vpop.f32.mrf.mxu0 }
0x1213   :  { %v2376_v58 = vadd.f32 %v1139_v48, %v1135_v54 }
0x1215   :  { %v1145_v59 = vsel %vm54_vm0, %v2376_v58, 0.0 }
0x1216   :  { %1146 = vadd.xlane.f32.xlu0 %v1145_v59 }
0x129b   :  { %v1144_v8 = vpop.xlane.xlu1 %1143 }
0x129c   :  { %v1148_v60 = vmul.f32 0.03125, %v1144_v8 }
0x129e   :  { %v1150_v35 = vsub.f32 %v2371_v51, %v1148_v60 }
0x129f   :  { %v1147_v61 = vpop.xlane.xlu0 %1146 }
0x12a0   :  { %v1149_v63 = vmul.f32 0.03125, %v1147_v61  ;;  %v1152_v2 = vmul.f32 %v1150_v35, %v1150_v35  ;;  %v1374_v61 = vrot.slane %v2296_v62, %v710_v29 }
0x12a2   :  { %v1151_v41 = vsub.f32 %v2376_v58, %v1149_v63  ;;  %v1154_v4 = vsel %vm54_vm0, %v1152_v2, 0.0 }
0x12a3   :  { %1155 = vadd.xlane.f32.xlu0 %v1154_v4 }
0x12a4   :  { %v1153_v5 = vmul.f32 %v1151_v41, %v1151_v41 }
0x12a6   :  { %v1157_v6 = vsel %vm54_vm0, %v1153_v5, 0.0  ;;  %v1377_v5 = vld [vmem:[#allocation2] sm:$0x3] }
0x12a7   :  { %1158 = vadd.xlane.f32.xlu1 %v1157_v6 }
0x132c   :  { %v1156_v10 = vpop.xlane.xlu0 %1155 }
0x132d   :  { %v1160_v11 = vmul.f32 0.03125, %v1156_v10  ;;  %v1891_v10 = vld [vmem:[%s2471_s9 + $0x8] sm:$0xff]  }
0x132f   :  { %v1162_v12 = vadd.f32 1e-05, %v1160_v11  ;;  %v1892_v11 = vld [vmem:[%s2471_s9] sm:$0xff]   ;;  %s2012_s9 = smov [#allocation5]  }
0x1330   :  { %v1159_v14 = vpop.xlane.xlu1 %1158  ;;  %s1544_s4 = sshll.u32 %s2012_s9, 4  ;;  %s1545_s4 = int_to_ptr.vmem [resolvable:$true] %s1544_s4 }
0x1331   :  { %1945 = vrsqrt.f32 %v1162_v12  ;;  %v1161_v16 = vmul.f32 0.03125, %v1159_v14  ;;  %s1979_s28 = scalar_lea.vmem %s1545_s4, 32  ;;  %p1984_p6 = scmp.lt.s32.totalorder %s1545_s4, %s1545_s4 }
0x1332   :  { %p1980_p5 = scmp.ne.s32.totalorder %s1545_s4, %s1979_s28  ;;  %p1985_p7 = scmp.lt.s32.totalorder %s1979_s28, %s1979_s28 }
0x1333   :  { %v1163_v25 = vadd.f32 1e-05, %v1161_v16 }
0x1334   :  { %p1986_p8 = por %p1985_p7, %p1984_p6 }
0x1335   :  { %1947 = vrsqrt.f32 %v1163_v25 }
0x1336   :  { %p1987_p9 = pnand %p1986_p8, %p1980_p5 }
0x133e   :  { %v1946_v17 = vpop.eup %1945 }
0x133f   :  { %v1166_v30 = vmul.f32 %v1946_v17, %v1150_v35  ;;  %v1629_v17 = vld [vmem:[%s2470_s8] ss:$0 sm:$0xff] }
0x1341   :  { %v1172_v21 = vmul.f32 %v1171_v18, %v1166_v30 }
0x1342   :  { %v1948_v53 = vpop.eup %1947 }
0x1343   :  { %v1167_v20 = vmul.f32 %v1948_v53, %v1151_v41  ;;  %v1178_v23 = vadd.f32 %v1177_v0, %v1172_v21 }
0x1345   :  { %v1173_v57 = vmul.f32 %v1171_v18, %v1167_v20  ;;  %v1630_v18 = vld [vmem:[%s2470_s8 + $0x1] ss:$0 sm:$0xff] }
0x1347   :  { %v1179_v39 = vadd.f32 %v1177_v0, %v1173_v57 }
0x1349   :  { %v1180_v27 = vpack.c.bf16 %v1179_v39, %v1178_v23 }
0x134b   :  { %1805 = vmatmul.mubr.msk.bf16.vlgmr.msra.gmra.mxu1 %vm54_vm0, %v1180_v27 }
0x134c   :  { %1832 = vmatprep.mubr.msk.f32.mxu1 %vm2005_vm1, %v2004_v15 }
0x140b   :  { %v1239_v36 = vpop.f32.mrf.mxu1 }
0x140c   :  { %v1240_v37 = vadd.f32 %v1239_v36, %v1189_v34 }
0x140d   :  { %v1806_v38 = vpop.f32.mrf.mxu1 }
0x140e   :  { %v1602_v40 = vmul.f32 -1.702, %v1240_v37 }
0x140f   :  { %v1242_v43 = vpop.f32.mrf.mxu1 }
0x1410   :  { %v1250_v26 = vmul.f32 1.442695, %v1602_v40  ;;  %v1243_v44 = vadd.f32 %v1242_v43, %v1189_v34 }
0x1411   :  { %v1807_v13 = vpop.f32.mrf.mxu1 }
0x1412   :  { %1949 = vpow2.f32 %v1250_v26  ;;  %v1603_v45 = vmul.f32 -1.702, %v1243_v44 }
0x1414   :  { %v1252_v47 = vmul.f32 1.442695, %v1603_v45 }
0x1416   :  { %1951 = vpow2.f32 %v1252_v47 }
0x141f   :  { %v1950_v48 = vpop.eup %1949 }
0x1420   :  { %v1254_v19 = vadd.f32 1.0, %v1950_v48 }
0x1422   :  { %1953 = vrcp.f32 %v1254_v19 }
0x1423   :  { %v1952_v49 = vpop.eup %1951 }
0x1424   :  { %v1255_v50 = vadd.f32 1.0, %v1952_v49 }
0x1426   :  { %1955 = vrcp.f32 %v1255_v50 }
0x142f   :  { %v1954_v52 = vpop.eup %1953 }
0x1430   :  { %v1260_v54 = vmul.f32 %v1954_v52, %v1240_v37 }
0x1433   :  { %v1956_v3 = vpop.eup %1955 }
0x1434   :  { %v1261_v55 = vmul.f32 %v1956_v3, %v1243_v44 }
0x1436   :  { %v1262_v56 = vpack.c.bf16 %v1261_v55, %v1260_v54 }
0x1438   :  { %1825 = vmatmul.mubr.bf16.vlgmr.msra.gmra.mxu0 %v1262_v56 }
0x14f8   :  { %v1362_v59 = vpop.f32.mrf.mxu0 }
0x14f9   :  { %v1369_v35 = vadd.f32 %v1362_v59, %v2371_v51 }
0x14fa   :  { %v1826_v8 = vpop.f32.mrf.mxu0 }
0x14fb   :  { %v1375_v4 = vadd.f32 %v1374_v61, %v1369_v35 }
0x14fc   :  { %v1365_v60 = vpop.f32.mrf.mxu0 }
0x14fd   :  { %v1370_v63 = vadd.f32 %v1365_v60, %v2376_v58 }
0x14fe   :  { %v1827_v2 = vpop.f32.mrf.mxu0 }
0x14ff   :  { %v1376_v41 = vadd.f32 %v1374_v61, %v1370_v63 }
0x1501   :  { %1829 = vmatpush3.msra.mxu1 %v1376_v41 }
0x1502   :  { %1830 = vmatprep.subr.mxu1 %v2004_v15 }
0x1503   :  { %1831 = vmatpush3.msra.mxu1 %v1375_v4 }
0x1504   :  { %1833 = vmatmul.mubr.msk.f32.vlgmr.msra.gmra.mxu1 %vm163_vm2, %v1377_v5  ;;  %1835 = vmatprep.subr.bf16.mxu1 %v2004_v15 }
0x1505   :  { %1839 = vmatprep.mubr.msk.bf16.mxu1 %vm2005_vm1, %v2004_v15  ;;  %1836 = vmatpush3.bf16.msra.mxu1 %v1891_v10 }
0x1506   :  { %1837 = vmatprep.subr.bf16.mxu1 %v2004_v15 }
0x1509   :  { %1838 = vmatpush3.bf16.msra.mxu1 %v1892_v11 }
0x15c4   :  { %v1447_v24 = vpop.f32.mrf.mxu1 }
0x15c5   :  { %v1454_v29 = vsel %vm1453_vm3, %v1447_v24, 0.0 }
0x15c6   :  { %1455 = vadd.xlane.f32.xlu0 %v1454_v29  ;;  %v1834_v62 = vpop.f32.mrf.mxu1 }
0x164f   :  { %v1456_v51 = vpop.xlane.xlu0 %1455 }
0x1650   :  { %v1457_v58 = vmul.f32 0.03125, %v1456_v51 }
0x1652   :  { %v1458_v6 = vsub.f32 %v1447_v24, %v1457_v58 }
0x1654   :  { %v1459_v7 = vmul.f32 %v1458_v6, %v1458_v6 }
0x1656   :  { %v1460_v9 = vsel %vm1453_vm3, %v1459_v7, 0.0 }
0x1657   :  { %1461 = vadd.xlane.f32.xlu1 %v1460_v9 }
0x16e0   :  { %v1462_v12 = vpop.xlane.xlu1 %1461 }
0x16e1   :  { %v1463_v14 = vmul.f32 0.03125, %v1462_v12 }
0x16e3   :  { %v1464_v16 = vadd.f32 1e-05, %v1463_v14 }
0x16e5   :  { %1957 = vrsqrt.f32 %v1464_v16 }
0x16f2   :  { %v1958_v25 = vpop.eup %1957 }
0x16f3   :  { %v1466_v30 = vmul.f32 %v1958_v25, %v1458_v6 }
0x16f5   :  { %v1471_v53 = vmul.f32 %v1629_v17, %v1466_v30 }
0x16f7   :  { %v1476_v20 = vadd.f32 %v1630_v18, %v1471_v53 }
0x16f9   :  { %v1477_v21 = vpack.c.bf16 %v1476_v20, %v1476_v20 }
0x16fb   :  { %1840 = vmatmul.mubr.msk.bf16.vlgmr.msra.gmra.mxu1 %vm54_vm0, %v1477_v21 }
0x17bb   :  { %v1531_v15 = vpop.f32.mrf.mxu1 }
0x17bc   :  { %1537 = vst [vmem:[#allocation5] sm:$0x3] %v1531_v15 }
0x17bd   :  { %v1841_v0 = vpop.f32.mrf.mxu1 }
0x17be   :  { %1990 = shalt.err (!%p1987_p9)
}
0x17bf   :  { %1547 = dma.vmem_to_hbm [thread:$0]  %s1545_s4, 32, %s2472_s10, [#allocation4]   ;;  %v1534_v57 = vpop.f32.mrf.mxu1 }
0x17c1   :  { %v1842_v23 = vpop.f32.mrf.mxu1 }
0x17c2   :  { %2001 = dma.done.wait [#allocation4], 32  }
0x17c3   :  { %2002 = vsyncadd [#allocation4], 4294967264 }
0x17c4   :  { %1551 = vsyncpa [#allocation3], 1 }
0x17c5   :  { %1552 = vsyncpa [#allocation4], 1 }

</bundles_post_ra>
